<compile_context>
chip_gen: v7x
topology: tpu7x:2x2x1
jax: 0.10.0
libtpu: 0.0.40
codegen_flags: <defaults>
</compile_context>

<pallas_src>
from typing import NamedTuple

import jax
import jax.numpy as jnp
from jax.experimental import pallas as pl
from jax.experimental.pallas import tpu as pltpu


def _round_up(n, m):
    return (n + m - 1) // m * m


# ---------------------------------------------------------------------------
# generation-aware hardware knobs (with safe fallbacks)
# ---------------------------------------------------------------------------
def _tpu_knobs():
    """Returns (vmem_capacity_bytes, num_tensorcores_per_chip)."""
    vmem_cap = 64 << 20                       # conservative default (v7x size)
    try:
        vmem_cap = int(pltpu.get_tpu_info().vmem_capacity_bytes)
    except Exception:
        pass
    kind = ""
    try:
        kind = jax.devices()[0].device_kind.lower()
    except Exception:
        pass
    n_tc = 2 if "v7" in kind else 1           # v7x has 2 TensorCores/chip
    return vmem_cap, n_tc


# ---------------------------------------------------------------------------
# one-time parameter preparation (hoisted out of the forward hot path)
# ---------------------------------------------------------------------------
class PreparedParams(NamedTuple):
    ws: tuple            # 7 padded (in_pad, out_pad) weights, bf16, transposed vs torch
    b_packed: jax.Array  # (7, max_out_pad) f32 biases, zero padded
    dims: tuple          # logical feature dims [d_in, w1, w2, w2, w2, w2, w3, d_out]
    pdims: tuple         # lane-padded (multiple-of-128) feature dims


def prepare_params(params, *, compute_dtype=jnp.bfloat16):
    """Pad every feature dim to a multiple of 128 and cast weights to bf16.
    Called once per parameter set (caching this is the single biggest win at
    production widths)."""
    ws, bs = params
    dims = [int(ws[0].shape[0])] + [int(w.shape[1]) for w in ws]
    pdims = [_round_up(d, 128) for d in dims]
    max_n = max(pdims[1:])

    ws_p = []
    for k, w in enumerate(ws):
        wp = jnp.zeros((pdims[k], pdims[k + 1]), jnp.float32)
        wp = wp.at[:dims[k], :dims[k + 1]].set(jnp.asarray(w, jnp.float32))
        ws_p.append(wp.astype(compute_dtype))          # bf16 MXU operand

    b_packed = jnp.zeros((len(bs), max_n), jnp.float32)  # biases stay f32
    for k, b in enumerate(bs):
        b_packed = b_packed.at[k, :dims[k + 1]].set(
            jnp.asarray(b, jnp.float32).reshape(-1))

    return PreparedParams(tuple(ws_p), b_packed, tuple(dims), tuple(pdims))


# ---------------------------------------------------------------------------
# fused MLP kernel
# ---------------------------------------------------------------------------
def _make_mlp_kernel(pdims):
    n_layers = len(pdims) - 1

    def kernel(x_ref, *refs):
        w_refs = refs[:n_layers]
        b_ref = refs[n_layers]
        o_ref = refs[n_layers + 1]

        h = x_ref[...]                                  # bf16 (tb, pdims[0])
        for k in range(n_layers):
            w = w_refs[k][...]
            acc = jnp.dot(h.astype(w.dtype), w,
                          preferred_element_type=jnp.float32)
            bias = b_ref[k:k + 1, :pdims[k + 1]]        # (1, out_pad_k) f32
            if k < n_layers - 1:
                h = jnp.maximum(acc + bias, 0.0)        # f32 epilogue
            else:
                o_ref[...] = (acc + bias).astype(o_ref.dtype)

    return kernel


# ---------------------------------------------------------------------------
# wrapper (equivalent of synthNet.forward / the nn.Sequential `top`)
# ---------------------------------------------------------------------------
def synthnet_forward(x, prepared: PreparedParams, *, batch_tile=None):
    dims, pdims = prepared.dims, prepared.pdims
    d_in, d_out = dims[0], dims[-1]
    compute_dtype = prepared.ws[0].dtype

    x = jnp.asarray(x, jnp.float32)
    if x.ndim == 1:
        x = x[None, :]      # matches torch `out.reshape(1, -1)`: output stays 2-D
    B = x.shape[0]
    assert x.shape[1] == d_in, (x.shape, d_in)

    vmem_cap, n_tc = _tpu_knobs()

    # ---- batch-tile selection (padding-aware, generation-aware)
    if batch_tile is None:
        # 128-MiB VMEM parts (v5e/v6e) can afford bigger tiles; v7x (64 MiB) 256
        batch_tile = 512 if vmem_cap >= (100 << 20) else 256
    steps = max(pl.cdiv(B, batch_tile), 1)
    if n_tc >= 2 and B >= 16:
        steps = max(steps, n_tc)              # keep v7x's 2nd TensorCore busy
    tb = _round_up(pl.cdiv(B, steps), 8)      # 8-row sublane hard constraint
    Bp = tb * steps                           # minimal batch padding

    # ---- zero-padded input, pre-cast to the MXU operand dtype
    xp = jnp.zeros((Bp, pdims[0]), compute_dtype)
    xp = xp.at[:B, :d_in].set(x.astype(compute_dtype))

    flat_params = list(prepared.ws) + [prepared.b_packed]
    kernel = _make_mlp_kernel(pdims)

    def _const_spec(shape, single_buffer):
        # Grid-invariant blocks: never re-DMA'd; Buffered(1) halves their
        # VMEM footprint (matters at production widths, esp. on v7x).
        if single_buffer:
            try:
                return pl.BlockSpec(shape, lambda i: (0, 0),
                                    pipeline_mode=pl.Buffered(1))
            except TypeError:
                pass
        return pl.BlockSpec(shape, lambda i: (0, 0))

    def _build(single_buffer):
        in_specs = [pl.BlockSpec((tb, pdims[0]), lambda i: (i, 0))]
        for w in prepared.ws:
            in_specs.append(_const_spec(w.shape, single_buffer))
        in_specs.append(_const_spec(prepared.b_packed.shape, single_buffer))

        # explicit VMEM budget: (single|double)-buffered weights/biases,
        # double-buffered IO tiles, a few activation slabs, headroom;
        # capped at 80% of this generation's physical VMEM.
        buf_w = 1 if single_buffer else 2
        bytes_w = sum(int(w.size) * w.dtype.itemsize
                      for w in prepared.ws) * buf_w
        bytes_b = int(prepared.b_packed.size) * 4 * buf_w
        bytes_io = (tb * pdims[0] * 2 + tb * pdims[-1] * 4) * 2
        bytes_act = tb * max(pdims) * 4 * 4
        needed = bytes_w + bytes_b + bytes_io + bytes_act + (4 << 20)
        vmem_limit = int(min(int(vmem_cap * 0.8), max(needed, 16 << 20)))

        return pl.pallas_call(
            kernel,
            out_shape=jax.ShapeDtypeStruct((Bp, pdims[-1]), jnp.float32),
            grid=(steps,),
            in_specs=in_specs,
            out_specs=pl.BlockSpec((tb, pdims[-1]), lambda i: (i, 0)),
            compiler_params=pltpu.CompilerParams(
                dimension_semantics=("parallel",),
                vmem_limit_bytes=vmem_limit),
        )

    try:
        out_p = _build(single_buffer=True)(xp, *flat_params)
    except Exception:
        # Fallback: default double-buffered constant inputs if Buffered(1)
        # is rejected by this jax/Mosaic version.
        out_p = _build(single_buffer=False)(xp, *flat_params)

    return out_p[:B, :d_out]


# ---------------------------------------------------------------------------
# init + plain-JAX references
# ---------------------------------------------------------------------------
def init_params(key, d_in, d_out, hidden_layer_sizes=(300, 300, 300)):
    """Deterministic init matching synthNet.__init__ layer shapes
    (PyTorch-style U(-1/sqrt(fan_in), 1/sqrt(fan_in))). Weights stored as
    (in, out), i.e. transposed vs torch, so y = x @ W + b."""
    w1, w2, w3 = hidden_layer_sizes
    dims = [d_in, w1, w2, w2, w2, w2, w3, d_out]
    ws, bs = [], []
    for i in range(7):
        fan_in, fan_out = dims[i], dims[i + 1]
        key, kw, kb = jax.random.split(key, 3)
        bound = 1.0 / (fan_in ** 0.5)
        ws.append(jax.random.uniform(kw, (fan_in, fan_out), jnp.float32,
                                     -bound, bound))
        bs.append(jax.random.uniform(kb, (1, fan_out), jnp.float32,
                                     -bound, bound))
    return ws, bs


def ref_forward_f32(x, params):
    ws, bs = params
    h = jnp.asarray(x, jnp.float32)
    if h.ndim == 1:
        h = h[None, :]
    for i in range(6):
        h = jnp.maximum(h @ ws[i] + bs[i], 0.0)
    return h @ ws[6] + bs[6]


def ref_forward_bf16(x, params):
    """Reference emulating the kernel's numerics (bf16 operands, f32 accum)."""
    ws, bs = params
    h = jnp.asarray(x, jnp.float32)
    if h.ndim == 1:
        h = h[None, :]
    for i in range(6):
        acc = jnp.dot(h.astype(jnp.bfloat16), ws[i].astype(jnp.bfloat16),
                      preferred_element_type=jnp.float32)
        h = jnp.maximum(acc + bs[i], 0.0)
    return jnp.dot(h.astype(jnp.bfloat16), ws[6].astype(jnp.bfloat16),
                   preferred_element_type=jnp.float32) + bs[6]


# TODO(synk): predict / predict_proba / predict_flattened_softmax / fit are
# host-side utilities (argmax, softmax-to-numpy, Adam training loop) outside
# the forward hot path and are not reproduced as Pallas kernels.

if __name__ == "__main__":
    key = jax.random.PRNGKey(0)
    d_in, d_out = 20, 5
    hidden = (32, 32, 32)          # small hidden sizes for the demo run
    batch = 64

    kp, kx = jax.random.split(key)
    params = init_params(kp, d_in, d_out, hidden)
    prepared = prepare_params(params)   # one-time pad + bf16 cast (hoisted)

    x = jax.random.normal(kx, (batch, d_in), jnp.float32)
    out = jax.block_until_ready(synthnet_forward(x, prepared))
    assert out.shape == (batch, d_out)

    # tight check vs a reference with matching (bf16-operand) numerics
    ref_bf16 = ref_forward_bf16(x, params)
    assert jnp.allclose(out, ref_bf16, atol=1e-2, rtol=1e-2), \
        "mismatch vs bf16-emulating reference"
    # loose check vs the pure-f32 reference
    ref_f32 = ref_forward_f32(x, params)
    assert jnp.allclose(out, ref_f32, atol=5e-2, rtol=5e-2), \
        "mismatch vs f32 reference"

    # ragged batch (exercises padding-aware batch tiling)
    x_small = jax.random.normal(jax.random.PRNGKey(1), (5, d_in), jnp.float32)
    out_small = jax.block_until_ready(synthnet_forward(x_small, prepared))
    assert out_small.shape == (5, d_out)
    assert jnp.allclose(out_small, ref_forward_bf16(x_small, params),
                        atol=1e-2, rtol=1e-2)

    # 1-D input (torch `out.reshape(1, -1)` behaviour)
    out_1d = jax.block_until_ready(synthnet_forward(x[0], prepared))
    assert out_1d.shape == (1, d_out)
    assert jnp.allclose(out_1d, out[:1], atol=1e-2, rtol=1e-2)

    print("KERNEL_OK")
</pallas_src>

<mosaic_0001>
module attributes {stable_mosaic.version = 11 : i64} {
  func.func @kernel(%arg0: i32, %arg1: memref<64x128xbf16, #tpu.memory_space<vmem>>, %arg2: memref<128x128xbf16, #tpu.memory_space<vmem>>, %arg3: memref<128x128xbf16, #tpu.memory_space<vmem>>, %arg4: memref<128x128xbf16, #tpu.memory_space<vmem>>, %arg5: memref<128x128xbf16, #tpu.memory_space<vmem>>, %arg6: memref<128x128xbf16, #tpu.memory_space<vmem>>, %arg7: memref<128x128xbf16, #tpu.memory_space<vmem>>, %arg8: memref<128x128xbf16, #tpu.memory_space<vmem>>, %arg9: memref<7x128xf32, #tpu.memory_space<vmem>>, %arg10: memref<64x128xf32, #tpu.memory_space<vmem>>) attributes {dimension_semantics = [#tpu.dimension_semantics<parallel>], iteration_bounds = array<i64: 1>, scalar_prefetch = 0 : i64, scratch_operands = 0 : i64, tpu.core_type = #tpu.core_type<tc>, window_params = [{transform_indices = @transform_0, window_bounds = array<i64: 64, 128>}, {pipeline_mode = #tpu.pipeline_mode<synchronous>, transform_indices = @transform_1, window_bounds = array<i64: 128, 128>}, {pipeline_mode = #tpu.pipeline_mode<synchronous>, transform_indices = @transform_2, window_bounds = array<i64: 128, 128>}, {pipeline_mode = #tpu.pipeline_mode<synchronous>, transform_indices = @transform_3, window_bounds = array<i64: 128, 128>}, {pipeline_mode = #tpu.pipeline_mode<synchronous>, transform_indices = @transform_4, window_bounds = array<i64: 128, 128>}, {pipeline_mode = #tpu.pipeline_mode<synchronous>, transform_indices = @transform_5, window_bounds = array<i64: 128, 128>}, {pipeline_mode = #tpu.pipeline_mode<synchronous>, transform_indices = @transform_6, window_bounds = array<i64: 128, 128>}, {pipeline_mode = #tpu.pipeline_mode<synchronous>, transform_indices = @transform_7, window_bounds = array<i64: 128, 128>}, {pipeline_mode = #tpu.pipeline_mode<synchronous>, transform_indices = @transform_8, window_bounds = array<i64: 7, 128>}, {transform_indices = @transform_9, window_bounds = array<i64: 64, 128>}]} {
    %c0 = arith.constant 0 : index
    %c0_0 = arith.constant 0 : index
    %0 = vector.load %arg1[%c0, %c0_0] : memref<64x128xbf16, #tpu.memory_space<vmem>>, vector<64x128xbf16>
    %c0_1 = arith.constant 0 : index
    %c0_2 = arith.constant 0 : index
    %1 = vector.load %arg2[%c0_1, %c0_2] : memref<128x128xbf16, #tpu.memory_space<vmem>>, vector<128x128xbf16>
    %cst = arith.constant dense<0.000000e+00> : vector<64x128xf32>
    %2 = tpu.matmul %0, %1, %cst {dimension_numbers = #tpu.dot_dimension_numbers<[1], [0], [0], [1], [0, 0, 1, 1], [], []>} : vector<64x128xbf16>, vector<128x128xbf16>, vector<64x128xf32> -> vector<64x128xf32>
    %c0_3 = arith.constant 0 : index
    %c0_4 = arith.constant 0 : index
    %3 = vector.load %arg9[%c0_3, %c0_4] : memref<7x128xf32, #tpu.memory_space<vmem>>, vector<1x128xf32>
    %4 = vector.broadcast %3 : vector<1x128xf32> to vector<64x128xf32>
    %5 = arith.addf %2, %4 : vector<64x128xf32>
    %cst_5 = arith.constant 0.000000e+00 : f32
    %6 = vector.broadcast %cst_5 : f32 to vector<64x128xf32>
    %7 = arith.maximumf %5, %6 : vector<64x128xf32>
    %c0_6 = arith.constant 0 : index
    %c0_7 = arith.constant 0 : index
    %8 = vector.load %arg3[%c0_6, %c0_7] : memref<128x128xbf16, #tpu.memory_space<vmem>>, vector<128x128xbf16>
    %9 = arith.truncf %7 : vector<64x128xf32> to vector<64x128xbf16>
    %cst_8 = arith.constant dense<0.000000e+00> : vector<64x128xf32>
    %10 = tpu.matmul %9, %8, %cst_8 {dimension_numbers = #tpu.dot_dimension_numbers<[1], [0], [0], [1], [0, 0, 1, 1], [], []>} : vector<64x128xbf16>, vector<128x128xbf16>, vector<64x128xf32> -> vector<64x128xf32>
    %c1 = arith.constant 1 : index
    %c0_9 = arith.constant 0 : index
    %11 = vector.load %arg9[%c1, %c0_9] : memref<7x128xf32, #tpu.memory_space<vmem>>, vector<1x128xf32>
    %12 = vector.broadcast %11 : vector<1x128xf32> to vector<64x128xf32>
    %13 = arith.addf %10, %12 : vector<64x128xf32>
    %cst_10 = arith.constant 0.000000e+00 : f32
    %14 = vector.broadcast %cst_10 : f32 to vector<64x128xf32>
    %15 = arith.maximumf %13, %14 : vector<64x128xf32>
    %c0_11 = arith.constant 0 : index
    %c0_12 = arith.constant 0 : index
    %16 = vector.load %arg4[%c0_11, %c0_12] : memref<128x128xbf16, #tpu.memory_space<vmem>>, vector<128x128xbf16>
    %17 = arith.truncf %15 : vector<64x128xf32> to vector<64x128xbf16>
    %cst_13 = arith.constant dense<0.000000e+00> : vector<64x128xf32>
    %18 = tpu.matmul %17, %16, %cst_13 {dimension_numbers = #tpu.dot_dimension_numbers<[1], [0], [0], [1], [0, 0, 1, 1], [], []>} : vector<64x128xbf16>, vector<128x128xbf16>, vector<64x128xf32> -> vector<64x128xf32>
    %c2 = arith.constant 2 : index
    %c0_14 = arith.constant 0 : index
    %19 = vector.load %arg9[%c2, %c0_14] : memref<7x128xf32, #tpu.memory_space<vmem>>, vector<1x128xf32>
    %20 = vector.broadcast %19 : vector<1x128xf32> to vector<64x128xf32>
    %21 = arith.addf %18, %20 : vector<64x128xf32>
    %cst_15 = arith.constant 0.000000e+00 : f32
    %22 = vector.broadcast %cst_15 : f32 to vector<64x128xf32>
    %23 = arith.maximumf %21, %22 : vector<64x128xf32>
    %c0_16 = arith.constant 0 : index
    %c0_17 = arith.constant 0 : index
    %24 = vector.load %arg5[%c0_16, %c0_17] : memref<128x128xbf16, #tpu.memory_space<vmem>>, vector<128x128xbf16>
    %25 = arith.truncf %23 : vector<64x128xf32> to vector<64x128xbf16>
    %cst_18 = arith.constant dense<0.000000e+00> : vector<64x128xf32>
    %26 = tpu.matmul %25, %24, %cst_18 {dimension_numbers = #tpu.dot_dimension_numbers<[1], [0], [0], [1], [0, 0, 1, 1], [], []>} : vector<64x128xbf16>, vector<128x128xbf16>, vector<64x128xf32> -> vector<64x128xf32>
    %c3 = arith.constant 3 : index
    %c0_19 = arith.constant 0 : index
    %27 = vector.load %arg9[%c3, %c0_19] : memref<7x128xf32, #tpu.memory_space<vmem>>, vector<1x128xf32>
    %28 = vector.broadcast %27 : vector<1x128xf32> to vector<64x128xf32>
    %29 = arith.addf %26, %28 : vector<64x128xf32>
    %cst_20 = arith.constant 0.000000e+00 : f32
    %30 = vector.broadcast %cst_20 : f32 to vector<64x128xf32>
    %31 = arith.maximumf %29, %30 : vector<64x128xf32>
    %c0_21 = arith.constant 0 : index
    %c0_22 = arith.constant 0 : index
    %32 = vector.load %arg6[%c0_21, %c0_22] : memref<128x128xbf16, #tpu.memory_space<vmem>>, vector<128x128xbf16>
    %33 = arith.truncf %31 : vector<64x128xf32> to vector<64x128xbf16>
    %cst_23 = arith.constant dense<0.000000e+00> : vector<64x128xf32>
    %34 = tpu.matmul %33, %32, %cst_23 {dimension_numbers = #tpu.dot_dimension_numbers<[1], [0], [0], [1], [0, 0, 1, 1], [], []>} : vector<64x128xbf16>, vector<128x128xbf16>, vector<64x128xf32> -> vector<64x128xf32>
    %c4 = arith.constant 4 : index
    %c0_24 = arith.constant 0 : index
    %35 = vector.load %arg9[%c4, %c0_24] : memref<7x128xf32, #tpu.memory_space<vmem>>, vector<1x128xf32>
    %36 = vector.broadcast %35 : vector<1x128xf32> to vector<64x128xf32>
    %37 = arith.addf %34, %36 : vector<64x128xf32>
    %cst_25 = arith.constant 0.000000e+00 : f32
    %38 = vector.broadcast %cst_25 : f32 to vector<64x128xf32>
    %39 = arith.maximumf %37, %38 : vector<64x128xf32>
    %c0_26 = arith.constant 0 : index
    %c0_27 = arith.constant 0 : index
    %40 = vector.load %arg7[%c0_26, %c0_27] : memref<128x128xbf16, #tpu.memory_space<vmem>>, vector<128x128xbf16>
    %41 = arith.truncf %39 : vector<64x128xf32> to vector<64x128xbf16>
    %cst_28 = arith.constant dense<0.000000e+00> : vector<64x128xf32>
    %42 = tpu.matmul %41, %40, %cst_28 {dimension_numbers = #tpu.dot_dimension_numbers<[1], [0], [0], [1], [0, 0, 1, 1], [], []>} : vector<64x128xbf16>, vector<128x128xbf16>, vector<64x128xf32> -> vector<64x128xf32>
    %c5 = arith.constant 5 : index
    %c0_29 = arith.constant 0 : index
    %43 = vector.load %arg9[%c5, %c0_29] : memref<7x128xf32, #tpu.memory_space<vmem>>, vector<1x128xf32>
    %44 = vector.broadcast %43 : vector<1x128xf32> to vector<64x128xf32>
    %45 = arith.addf %42, %44 : vector<64x128xf32>
    %cst_30 = arith.constant 0.000000e+00 : f32
    %46 = vector.broadcast %cst_30 : f32 to vector<64x128xf32>
    %47 = arith.maximumf %45, %46 : vector<64x128xf32>
    %c0_31 = arith.constant 0 : index
    %c0_32 = arith.constant 0 : index
    %48 = vector.load %arg8[%c0_31, %c0_32] : memref<128x128xbf16, #tpu.memory_space<vmem>>, vector<128x128xbf16>
    %49 = arith.truncf %47 : vector<64x128xf32> to vector<64x128xbf16>
    %cst_33 = arith.constant dense<0.000000e+00> : vector<64x128xf32>
    %50 = tpu.matmul %49, %48, %cst_33 {dimension_numbers = #tpu.dot_dimension_numbers<[1], [0], [0], [1], [0, 0, 1, 1], [], []>} : vector<64x128xbf16>, vector<128x128xbf16>, vector<64x128xf32> -> vector<64x128xf32>
    %c6 = arith.constant 6 : index
    %c0_34 = arith.constant 0 : index
    %51 = vector.load %arg9[%c6, %c0_34] : memref<7x128xf32, #tpu.memory_space<vmem>>, vector<1x128xf32>
    %52 = vector.broadcast %51 : vector<1x128xf32> to vector<64x128xf32>
    %53 = arith.addf %50, %52 : vector<64x128xf32>
    %c0_35 = arith.constant 0 : index
    %c0_36 = arith.constant 0 : index
    %54 = vector.load %arg10[%c0_35, %c0_36] : memref<64x128xf32, #tpu.memory_space<vmem>>, vector<64x128xf32>
    tpu.vector_store %arg10[%c0_35, %c0_36], %53 {strides = array<i32>} : memref<64x128xf32, #tpu.memory_space<vmem>>, vector<64x128xf32>,
    return
  }
  func.func @transform_0(%arg0: i32) -> (i32, i32) {
    %c0_i32 = arith.constant 0 : i32
    %c0_i32_0 = arith.constant 0 : i32
    return %arg0, %c0_i32 : i32, i32
  }
  func.func @transform_1(%arg0: i32) -> (i32, i32) {
    %c0_i32 = arith.constant 0 : i32
    %c0_i32_0 = arith.constant 0 : i32
    %c0_i32_1 = arith.constant 0 : i32
    return %c0_i32, %c0_i32_0 : i32, i32
  }
  func.func @transform_2(%arg0: i32) -> (i32, i32) {
    %c0_i32 = arith.constant 0 : i32
    %c0_i32_0 = arith.constant 0 : i32
    %c0_i32_1 = arith.constant 0 : i32
    return %c0_i32, %c0_i32_0 : i32, i32
  }
  func.func @transform_3(%arg0: i32) -> (i32, i32) {
    %c0_i32 = arith.constant 0 : i32
    %c0_i32_0 = arith.constant 0 : i32
    %c0_i32_1 = arith.constant 0 : i32
    return %c0_i32, %c0_i32_0 : i32, i32
  }
  func.func @transform_4(%arg0: i32) -> (i32, i32) {
    %c0_i32 = arith.constant 0 : i32
    %c0_i32_0 = arith.constant 0 : i32
    %c0_i32_1 = arith.constant 0 : i32
    return %c0_i32, %c0_i32_0 : i32, i32
  }
  func.func @transform_5(%arg0: i32) -> (i32, i32) {
    %c0_i32 = arith.constant 0 : i32
    %c0_i32_0 = arith.constant 0 : i32
    %c0_i32_1 = arith.constant 0 : i32
    return %c0_i32, %c0_i32_0 : i32, i32
  }
  func.func @transform_6(%arg0: i32) -> (i32, i32) {
    %c0_i32 = arith.constant 0 : i32
    %c0_i32_0 = arith.constant 0 : i32
    %c0_i32_1 = arith.constant 0 : i32
    return %c0_i32, %c0_i32_0 : i32, i32
  }
  func.func @transform_7(%arg0: i32) -> (i32, i32) {
    %c0_i32 = arith.constant 0 : i32
    %c0_i32_0 = arith.constant 0 : i32
    %c0_i32_1 = arith.constant 0 : i32
    return %c0_i32, %c0_i32_0 : i32, i32
  }
  func.func @transform_8(%arg0: i32) -> (i32, i32) {
    %c0_i32 = arith.constant 0 : i32
    %c0_i32_0 = arith.constant 0 : i32
    %c0_i32_1 = arith.constant 0 : i32
    return %c0_i32, %c0_i32_0 : i32, i32
  }
  func.func @transform_9(%arg0: i32) -> (i32, i32) {
    %c0_i32 = arith.constant 0 : i32
    %c0_i32_0 = arith.constant 0 : i32
    return %arg0, %c0_i32 : i32, i32
  }
}

module attributes {stable_mosaic.version = 11 : i64} {
  func.func @kernel(%arg0: i32, %arg1: memref<64x128xbf16, #tpu.memory_space<vmem>>, %arg2: memref<128x128xbf16, #tpu.memory_space<vmem>>, %arg3: memref<128x128xbf16, #tpu.memory_space<vmem>>, %arg4: memref<128x128xbf16, #tpu.memory_space<vmem>>, %arg5: memref<128x128xbf16, #tpu.memory_space<vmem>>, %arg6: memref<128x128xbf16, #tpu.memory_space<vmem>>, %arg7: memref<128x128xbf16, #tpu.memory_space<vmem>>, %arg8: memref<128x128xbf16, #tpu.memory_space<vmem>>, %arg9: memref<7x128xf32, #tpu.memory_space<vmem>>, %arg10: memref<64x128xf32, #tpu.memory_space<vmem>>) attributes {dimension_semantics = [#tpu.dimension_semantics<parallel>], iteration_bounds = array<i64: 1>, scalar_prefetch = 0 : i64, scratch_operands = 0 : i64, tpu.core_type = #tpu.core_type<tc>, window_params = [{transform_indices = @transform_0, window_bounds = array<i64: 64, 128>}, {pipeline_mode = #tpu.pipeline_mode<synchronous>, transform_indices = @transform_1, window_bounds = array<i64: 128, 128>}, {pipeline_mode = #tpu.pipeline_mode<synchronous>, transform_indices = @transform_2, window_bounds = array<i64: 128, 128>}, {pipeline_mode = #tpu.pipeline_mode<synchronous>, transform_indices = @transform_3, window_bounds = array<i64: 128, 128>}, {pipeline_mode = #tpu.pipeline_mode<synchronous>, transform_indices = @transform_4, window_bounds = array<i64: 128, 128>}, {pipeline_mode = #tpu.pipeline_mode<synchronous>, transform_indices = @transform_5, window_bounds = array<i64: 128, 128>}, {pipeline_mode = #tpu.pipeline_mode<synchronous>, transform_indices = @transform_6, window_bounds = array<i64: 128, 128>}, {pipeline_mode = #tpu.pipeline_mode<synchronous>, transform_indices = @transform_7, window_bounds = array<i64: 128, 128>}, {pipeline_mode = #tpu.pipeline_mode<synchronous>, transform_indices = @transform_8, window_bounds = array<i64: 7, 128>}, {transform_indices = @transform_9, window_bounds = array<i64: 64, 128>}]} {
    %c0 = arith.constant 0 : index
    %c0_0 = arith.constant 0 : index
    %0 = vector.load %arg1[%c0, %c0_0] : memref<64x128xbf16, #tpu.memory_space<vmem>>, vector<64x128xbf16>
    %c0_1 = arith.constant 0 : index
    %c0_2 = arith.constant 0 : index
    %1 = vector.load %arg2[%c0_1, %c0_2] : memref<128x128xbf16, #tpu.memory_space<vmem>>, vector<128x128xbf16>
    %cst = arith.constant dense<0.000000e+00> : vector<64x128xf32>
    %2 = tpu.matmul %0, %1, %cst {dimension_numbers = #tpu.dot_dimension_numbers<[1], [0], [0], [1], [0, 0, 1, 1], [], []>} : vector<64x128xbf16>, vector<128x128xbf16>, vector<64x128xf32> -> vector<64x128xf32>
    %c0_3 = arith.constant 0 : index
    %c0_4 = arith.constant 0 : index
    %3 = vector.load %arg9[%c0_3, %c0_4] : memref<7x128xf32, #tpu.memory_space<vmem>>, vector<1x128xf32>
    %4 = vector.broadcast %3 : vector<1x128xf32> to vector<64x128xf32>
    %5 = arith.addf %2, %4 : vector<64x128xf32>
    %cst_5 = arith.constant 0.000000e+00 : f32
    %6 = vector.broadcast %cst_5 : f32 to vector<64x128xf32>
    %7 = arith.maximumf %5, %6 : vector<64x128xf32>
    %c0_6 = arith.constant 0 : index
    %c0_7 = arith.constant 0 : index
    %8 = vector.load %arg3[%c0_6, %c0_7] : memref<128x128xbf16, #tpu.memory_space<vmem>>, vector<128x128xbf16>
    %9 = arith.truncf %7 : vector<64x128xf32> to vector<64x128xbf16>
    %cst_8 = arith.constant dense<0.000000e+00> : vector<64x128xf32>
    %10 = tpu.matmul %9, %8, %cst_8 {dimension_numbers = #tpu.dot_dimension_numbers<[1], [0], [0], [1], [0, 0, 1, 1], [], []>} : vector<64x128xbf16>, vector<128x128xbf16>, vector<64x128xf32> -> vector<64x128xf32>
    %c1 = arith.constant 1 : index
    %c0_9 = arith.constant 0 : index
    %11 = vector.load %arg9[%c1, %c0_9] : memref<7x128xf32, #tpu.memory_space<vmem>>, vector<1x128xf32>
    %12 = vector.broadcast %11 : vector<1x128xf32> to vector<64x128xf32>
    %13 = arith.addf %10, %12 : vector<64x128xf32>
    %cst_10 = arith.constant 0.000000e+00 : f32
    %14 = vector.broadcast %cst_10 : f32 to vector<64x128xf32>
    %15 = arith.maximumf %13, %14 : vector<64x128xf32>
    %c0_11 = arith.constant 0 : index
    %c0_12 = arith.constant 0 : index
    %16 = vector.load %arg4[%c0_11, %c0_12] : memref<128x128xbf16, #tpu.memory_space<vmem>>, vector<128x128xbf16>
    %17 = arith.truncf %15 : vector<64x128xf32> to vector<64x128xbf16>
    %cst_13 = arith.constant dense<0.000000e+00> : vector<64x128xf32>
    %18 = tpu.matmul %17, %16, %cst_13 {dimension_numbers = #tpu.dot_dimension_numbers<[1], [0], [0], [1], [0, 0, 1, 1], [], []>} : vector<64x128xbf16>, vector<128x128xbf16>, vector<64x128xf32> -> vector<64x128xf32>
    %c2 = arith.constant 2 : index
    %c0_14 = arith.constant 0 : index
    %19 = vector.load %arg9[%c2, %c0_14] : memref<7x128xf32, #tpu.memory_space<vmem>>, vector<1x128xf32>
    %20 = vector.broadcast %19 : vector<1x128xf32> to vector<64x128xf32>
    %21 = arith.addf %18, %20 : vector<64x128xf32>
    %cst_15 = arith.constant 0.000000e+00 : f32
    %22 = vector.broadcast %cst_15 : f32 to vector<64x128xf32>
    %23 = arith.maximumf %21, %22 : vector<64x128xf32>
    %c0_16 = arith.constant 0 : index
    %c0_17 = arith.constant 0 : index
    %24 = vector.load %arg5[%c0_16, %c0_17] : memref<128x128xbf16, #tpu.memory_space<vmem>>, vector<128x128xbf16>
    %25 = arith.truncf %23 : vector<64x128xf32> to vector<64x128xbf16>
    %cst_18 = arith.constant dense<0.000000e+00> : vector<64x128xf32>
    %26 = tpu.matmul %25, %24, %cst_18 {dimension_numbers = #tpu.dot_dimension_numbers<[1], [0], [0], [1], [0, 0, 1, 1], [], []>} : vector<64x128xbf16>, vector<128x128xbf16>, vector<64x128xf32> -> vector<64x128xf32>
    %c3 = arith.constant 3 : index
    %c0_19 = arith.constant 0 : index
    %27 = vector.load %arg9[%c3, %c0_19] : memref<7x128xf32, #tpu.memory_space<vmem>>, vector<1x128xf32>
    %28 = vector.broadcast %27 : vector<1x128xf32> to vector<64x128xf32>
    %29 = arith.addf %26, %28 : vector<64x128xf32>
    %cst_20 = arith.constant 0.000000e+00 : f32
    %30 = vector.broadcast %cst_20 : f32 to vector<64x128xf32>
    %31 = arith.maximumf %29, %30 : vector<64x128xf32>
    %c0_21 = arith.constant 0 : index
    %c0_22 = arith.constant 0 : index
    %32 = vector.load %arg6[%c0_21, %c0_22] : memref<128x128xbf16, #tpu.memory_space<vmem>>, vector<128x128xbf16>
    %33 = arith.truncf %31 : vector<64x128xf32> to vector<64x128xbf16>
    %cst_23 = arith.constant dense<0.000000e+00> : vector<64x128xf32>
    %34 = tpu.matmul %33, %32, %cst_23 {dimension_numbers = #tpu.dot_dimension_numbers<[1], [0], [0], [1], [0, 0, 1, 1], [], []>} : vector<64x128xbf16>, vector<128x128xbf16>, vector<64x128xf32> -> vector<64x128xf32>
    %c4 = arith.constant 4 : index
    %c0_24 = arith.constant 0 : index
    %35 = vector.load %arg9[%c4, %c0_24] : memref<7x128xf32, #tpu.memory_space<vmem>>, vector<1x128xf32>
    %36 = vector.broadcast %35 : vector<1x128xf32> to vector<64x128xf32>
    %37 = arith.addf %34, %36 : vector<64x128xf32>
    %cst_25 = arith.constant 0.000000e+00 : f32
    %38 = vector.broadcast %cst_25 : f32 to vector<64x128xf32>
    %39 = arith.maximumf %37, %38 : vector<64x128xf32>
    %c0_26 = arith.constant 0 : index
    %c0_27 = arith.constant 0 : index
    %40 = vector.load %arg7[%c0_26, %c0_27] : memref<128x128xbf16, #tpu.memory_space<vmem>>, vector<128x128xbf16>
    %41 = arith.truncf %39 : vector<64x128xf32> to vector<64x128xbf16>
    %cst_28 = arith.constant dense<0.000000e+00> : vector<64x128xf32>
    %42 = tpu.matmul %41, %40, %cst_28 {dimension_numbers = #tpu.dot_dimension_numbers<[1], [0], [0], [1], [0, 0, 1, 1], [], []>} : vector<64x128xbf16>, vector<128x128xbf16>, vector<64x128xf32> -> vector<64x128xf32>
    %c5 = arith.constant 5 : index
    %c0_29 = arith.constant 0 : index
    %43 = vector.load %arg9[%c5, %c0_29] : memref<7x128xf32, #tpu.memory_space<vmem>>, vector<1x128xf32>
    %44 = vector.broadcast %43 : vector<1x128xf32> to vector<64x128xf32>
    %45 = arith.addf %42, %44 : vector<64x128xf32>
    %cst_30 = arith.constant 0.000000e+00 : f32
    %46 = vector.broadcast %cst_30 : f32 to vector<64x128xf32>
    %47 = arith.maximumf %45, %46 : vector<64x128xf32>
    %c0_31 = arith.constant 0 : index
    %c0_32 = arith.constant 0 : index
    %48 = vector.load %arg8[%c0_31, %c0_32] : memref<128x128xbf16, #tpu.memory_space<vmem>>, vector<128x128xbf16>
    %49 = arith.truncf %47 : vector<64x128xf32> to vector<64x128xbf16>
    %cst_33 = arith.constant dense<0.000000e+00> : vector<64x128xf32>
    %50 = tpu.matmul %49, %48, %cst_33 {dimension_numbers = #tpu.dot_dimension_numbers<[1], [0], [0], [1], [0, 0, 1, 1], [], []>} : vector<64x128xbf16>, vector<128x128xbf16>, vector<64x128xf32> -> vector<64x128xf32>
    %c6 = arith.constant 6 : index
    %c0_34 = arith.constant 0 : index
    %51 = vector.load %arg9[%c6, %c0_34] : memref<7x128xf32, #tpu.memory_space<vmem>>, vector<1x128xf32>
    %52 = vector.broadcast %51 : vector<1x128xf32> to vector<64x128xf32>
    %53 = arith.addf %50, %52 : vector<64x128xf32>
    %c0_35 = arith.constant 0 : index
    %c0_36 = arith.constant 0 : index
    %54 = vector.load %arg10[%c0_35, %c0_36] : memref<64x128xf32, #tpu.memory_space<vmem>>, vector<64x128xf32>
    tpu.vector_store %arg10[%c0_35, %c0_36], %53 {strides = array<i32>} : memref<64x128xf32, #tpu.memory_space<vmem>>, vector<64x128xf32>,
    return
  }
  func.func @transform_0(%arg0: i32) -> (i32, i32) {
    %c0_i32 = arith.constant 0 : i32
    %c0_i32_0 = arith.constant 0 : i32
    return %arg0, %c0_i32 : i32, i32
  }
  func.func @transform_1(%arg0: i32) -> (i32, i32) {
    %c0_i32 = arith.constant 0 : i32
    %c0_i32_0 = arith.constant 0 : i32
    %c0_i32_1 = arith.constant 0 : i32
    return %c0_i32, %c0_i32_0 : i32, i32
  }
  func.func @transform_2(%arg0: i32) -> (i32, i32) {
    %c0_i32 = arith.constant 0 : i32
    %c0_i32_0 = arith.constant 0 : i32
    %c0_i32_1 = arith.constant 0 : i32
    return %c0_i32, %c0_i32_0 : i32, i32
  }
  func.func @transform_3(%arg0: i32) -> (i32, i32) {
    %c0_i32 = arith.constant 0 : i32
    %c0_i32_0 = arith.constant 0 : i32
    %c0_i32_1 = arith.constant 0 : i32
    return %c0_i32, %c0_i32_0 : i32, i32
  }
  func.func @transform_4(%arg0: i32) -> (i32, i32) {
    %c0_i32 = arith.constant 0 : i32
    %c0_i32_0 = arith.constant 0 : i32
    %c0_i32_1 = arith.constant 0 : i32
    return %c0_i32, %c0_i32_0 : i32, i32
  }
  func.func @transform_5(%arg0: i32) -> (i32, i32) {
    %c0_i32 = arith.constant 0 : i32
    %c0_i32_0 = arith.constant 0 : i32
    %c0_i32_1 = arith.constant 0 : i32
    return %c0_i32, %c0_i32_0 : i32, i32
  }
  func.func @transform_6(%arg0: i32) -> (i32, i32) {
    %c0_i32 = arith.constant 0 : i32
    %c0_i32_0 = arith.constant 0 : i32
    %c0_i32_1 = arith.constant 0 : i32
    return %c0_i32, %c0_i32_0 : i32, i32
  }
  func.func @transform_7(%arg0: i32) -> (i32, i32) {
    %c0_i32 = arith.constant 0 : i32
    %c0_i32_0 = arith.constant 0 : i32
    %c0_i32_1 = arith.constant 0 : i32
    return %c0_i32, %c0_i32_0 : i32, i32
  }
  func.func @transform_8(%arg0: i32) -> (i32, i32) {
    %c0_i32 = arith.constant 0 : i32
    %c0_i32_0 = arith.constant 0 : i32
    %c0_i32_1 = arith.constant 0 : i32
    return %c0_i32, %c0_i32_0 : i32, i32
  }
  func.func @transform_9(%arg0: i32) -> (i32, i32) {
    %c0_i32 = arith.constant 0 : i32
    %c0_i32_0 = arith.constant 0 : i32
    return %arg0, %c0_i32 : i32, i32
  }
}

</mosaic_0001>

<bundles_post_ra>
// kernel: tpu_custom_call.1
= control target key start
LH: loop header
LB: loop body
LE: loop exit
PB: predicated region body
PF: predicated region fallthrough
CT: control target
= control target key end

     0   :  { %14 = vsyncpa [#allocation3], 0  ;;  %s2076_s0 = inlined_call_operand.hbm [shape: bf16[64,128], index: 0, kind: input, shape index: {}]   ;;  %s2077_s1 = inlined_call_operand.hbm [shape: bf16[128,128], index: 1, kind: input, shape index: {}]   ;;  %s2078_s2 = inlined_call_operand.hbm [shape: bf16[128,128], index: 2, kind: input, shape index: {}]   ;;  %s2079_s3 = inlined_call_operand.hbm [shape: bf16[128,128], index: 3, kind: input, shape index: {}]   ;;  %s2080_s4 = inlined_call_operand.hbm [shape: bf16[128,128], index: 4, kind: input, shape index: {}]   ;;  %s2081_s5 = inlined_call_operand.hbm [shape: bf16[128,128], index: 5, kind: input, shape index: {}]   ;;  %s2082_s6 = inlined_call_operand.hbm [shape: bf16[128,128], index: 6, kind: input, shape index: {}]   ;;  %s2083_s7 = inlined_call_operand.hbm [shape: bf16[128,128], index: 7, kind: input, shape index: {}]   ;;  %s2084_s8 = inlined_call_operand.vmem [shape: f32[7,128], index: 8, kind: input, shape index: {}]   ;;  %s2085_s9 = inlined_call_operand.hbm [shape: f32[64,128], index: 9, kind: output, shape index: {}]  }
   0x1   :  { %15 = vsyncpa [#allocation6], 0 }
   0x2   :  { %16 = vsyncpa [#allocation9], 0 }
   0x3   :  { %17 = vsyncpa [#allocation12], 0 }
   0x4   :  { %18 = vsyncpa [#allocation15], 0 }
   0x5   :  { %19 = vsyncpa [#allocation4], 0  ;;  %s1832_s30 = smov [#allocation5]   ;;  %s1833_s11 = smov [#allocation8]  }
   0x6   :  { %s37_s10 = sshll.u32 %s1832_s30, 4  ;;  %s61_s12 = sshll.u32 %s1833_s11, 4  ;;  %s38_s10 = int_to_ptr.vmem [resolvable:$true] %s37_s10  ;;  %s1895_s12 = int_to_ptr.vmem [resolvable:$true] %s61_s12 }
   0x7   :  { %s1622_s15 = scalar_lea.hbm %s2077_s1, 1024 }
   0x8   :  { %p1623_p0 = scmp.ne.s32.totalorder %s2077_s1, %s1622_s15  ;;  %p1626_p1 = scmp.lt.u32.totalorder %s1622_s15, %s2077_s1 }
   0xa   :  { %p1628_p2 = pnand %p1626_p1, %p1623_p0 }
   0xc   :  { %1631 = shalt.err (!%p1628_p2)
}
   0xd   :  { %s1632_s20 = scalar_lea.vmem %s38_s10, 1024  ;;  %p1637_p4 = scmp.lt.s32.totalorder %s38_s10, %s38_s10 }
   0xe   :  { %p1633_p3 = scmp.ne.s32.totalorder %s38_s10, %s1632_s20  ;;  %p1638_p5 = scmp.lt.s32.totalorder %s1632_s20, %s1632_s20 }
  0x10   :  { %p1639_p6 = por %p1638_p5, %p1637_p4 }
  0x12   :  { %p1640_p7 = pnand %p1639_p6, %p1633_p3 }
  0x14   :  { %1643 = shalt.err (!%p1640_p7)
}
  0x15   :  { %s1834_s21 = smov 64   ;;  %s1835_s22 = smov 4  }
  0x16   :  { %43 = dma.hbm_to_vmem [thread:$0]  %s2077_s1, 1024, %s38_s10, [#allocation6], %s1834_s21, %s1834_s21, %s1835_s22  }
  0x17   :  { %s1644_s27 = scalar_lea.hbm %s2079_s3, 1024 }
  0x18   :  { %p1645_p8 = scmp.ne.s32.totalorder %s2079_s3, %s1644_s27  ;;  %p1648_p9 = scmp.lt.u32.totalorder %s1644_s27, %s2079_s3 }
  0x1a   :  { %p1650_p10 = pnand %p1648_p9, %p1645_p8 }
  0x1c   :  { %1653 = shalt.err (!%p1650_p10)
}
  0x1d   :  { %s1654_s13 = scalar_lea.vmem %s1895_s12, 1024  ;;  %p1659_p12 = scmp.lt.s32.totalorder %s1895_s12, %s1895_s12 }
  0x1e   :  { %p1655_p11 = scmp.ne.s32.totalorder %s1895_s12, %s1654_s13  ;;  %p1660_p13 = scmp.lt.s32.totalorder %s1654_s13, %s1654_s13 }
  0x20   :  { %p1661_p0 = por %p1660_p13, %p1659_p12 }
  0x22   :  { %p1662_p1 = pnand %p1661_p0, %p1655_p11 }
  0x24   :  { %1665 = shalt.err (!%p1662_p1)
}
  0x25   :  { %67 = dma.hbm_to_vmem [thread:$0]  %s2079_s3, 1024, %s1895_s12, [#allocation9], %s1834_s21, %s1834_s21, %s1835_s22  }
  0x26   :  { %s1836_s14 = smov [#allocation11]   ;;  %s1837_s16 = smov [#allocation2]  }
  0x27   :  { %s85_s15 = sshll.u32 %s1836_s14, 4  ;;  %s25_s17 = sshll.u32 %s1837_s16, 4  ;;  %s86_s15 = int_to_ptr.vmem [resolvable:$true] %s85_s15  ;;  %s1932_s17 = int_to_ptr.vmem [resolvable:$true] %s25_s17 }
  0x28   :  { %s1666_s20 = scalar_lea.hbm %s2081_s5, 1024 }
  0x29   :  { %p1667_p2 = scmp.ne.s32.totalorder %s2081_s5, %s1666_s20  ;;  %p1670_p3 = scmp.lt.u32.totalorder %s1666_s20, %s2081_s5 }
  0x2b   :  { %p1672_p4 = pnand %p1670_p3, %p1667_p2 }
  0x2d   :  { %1675 = shalt.err (!%p1672_p4)
}
  0x2e   :  { %s1676_s3 = scalar_lea.vmem %s86_s15, 1024  ;;  %p1681_p6 = scmp.lt.s32.totalorder %s86_s15, %s86_s15 }
  0x2f   :  { %p1677_p5 = scmp.ne.s32.totalorder %s86_s15, %s1676_s3  ;;  %p1682_p7 = scmp.lt.s32.totalorder %s1676_s3, %s1676_s3 }
  0x31   :  { %p1683_p8 = por %p1682_p7, %p1681_p6 }
  0x33   :  { %p1684_p9 = pnand %p1683_p8, %p1677_p5 }
  0x35   :  { %1687 = shalt.err (!%p1684_p9)
}
  0x36   :  { %91 = dma.hbm_to_vmem [thread:$0]  %s2081_s5, 1024, %s86_s15, [#allocation12], %s1834_s21, %s1834_s21, %s1835_s22  }
  0x37   :  { %s1688_s30 = scalar_lea.hbm %s2076_s0, 512 }
  0x38   :  { %p1689_p10 = scmp.ne.s32.totalorder %s2076_s0, %s1688_s30  ;;  %p1692_p11 = scmp.lt.u32.totalorder %s1688_s30, %s2076_s0 }
  0x3a   :  { %p1694_p12 = pnand %p1692_p11, %p1689_p10 }
  0x3c   :  { %1697 = shalt.err (!%p1694_p12)
}
  0x3d   :  { %s1698_s14 = scalar_lea.vmem %s1932_s17, 512  ;;  %p1703_p0 = scmp.lt.s32.totalorder %s1932_s17, %s1932_s17 }
  0x3e   :  { %p1699_p13 = scmp.ne.s32.totalorder %s1932_s17, %s1698_s14  ;;  %p1704_p1 = scmp.lt.s32.totalorder %s1698_s14, %s1698_s14 }
  0x40   :  { %p1705_p2 = por %p1704_p1, %p1703_p0 }
  0x42   :  { %p1706_p3 = pnand %p1705_p2, %p1699_p13 }
  0x44   :  { %1709 = shalt.err (!%p1706_p3)
}
  0x45   :  { %31 = dma.hbm_to_vmem [thread:$0]  %s2076_s0, 512, %s1932_s17, [#allocation3], %s1834_s21, %s1834_s21, %s1835_s22  }
  0x46   :  { %s1838_s16 = smov [#allocation7]   ;;  %s1839_s19 = smov [#allocation10]  }
  0x47   :  { %s49_s18 = sshll.u32 %s1838_s16, 4  ;;  %s73_s20 = sshll.u32 %s1839_s19, 4  ;;  %s50_s18 = int_to_ptr.vmem [resolvable:$true] %s49_s18  ;;  %s1969_s20 = int_to_ptr.vmem [resolvable:$true] %s73_s20 }
  0x48   :  { %s1710_s25 = scalar_lea.hbm %s2078_s2, 1024 }
  0x49   :  { %p1711_p4 = scmp.ne.s32.totalorder %s2078_s2, %s1710_s25  ;;  %p1714_p5 = scmp.lt.u32.totalorder %s1710_s25, %s2078_s2 }
  0x4b   :  { %p1716_p6 = pnand %p1714_p5, %p1711_p4 }
  0x4d   :  { %1719 = shalt.err (!%p1716_p6)
}
  0x4e   :  { %s1720_s0 = scalar_lea.vmem %s50_s18, 1024  ;;  %p1725_p8 = scmp.lt.s32.totalorder %s50_s18, %s50_s18 }
  0x4f   :  { %p1721_p7 = scmp.ne.s32.totalorder %s50_s18, %s1720_s0  ;;  %p1726_p9 = scmp.lt.s32.totalorder %s1720_s0, %s1720_s0 }
  0x51   :  { %p1727_p10 = por %p1726_p9, %p1725_p8 }
  0x53   :  { %p1728_p11 = pnand %p1727_p10, %p1721_p7 }
  0x55   :  { %1731 = shalt.err (!%p1728_p11)
}
  0x56   :  { %55 = dma.hbm_to_vmem [thread:$0]  %s2078_s2, 1024, %s50_s18, [#allocation6], %s1834_s21, %s1834_s21, %s1835_s22  }
  0x57   :  { %s1732_s11 = scalar_lea.hbm %s2080_s4, 1024 }
  0x58   :  { %p1733_p12 = scmp.ne.s32.totalorder %s2080_s4, %s1732_s11  ;;  %p1736_p13 = scmp.lt.u32.totalorder %s1732_s11, %s2080_s4 }
  0x5a   :  { %p1738_p0 = pnand %p1736_p13, %p1733_p12 }
  0x5c   :  { %1741 = shalt.err (!%p1738_p0)
}
  0x5d   :  { %s1742_s5 = scalar_lea.vmem %s1969_s20, 1024  ;;  %p1747_p2 = scmp.lt.s32.totalorder %s1969_s20, %s1969_s20 }
  0x5e   :  { %p1743_p1 = scmp.ne.s32.totalorder %s1969_s20, %s1742_s5  ;;  %p1748_p3 = scmp.lt.s32.totalorder %s1742_s5, %s1742_s5 }
  0x60   :  { %p1749_p4 = por %p1748_p3, %p1747_p2 }
  0x62   :  { %p1750_p5 = pnand %p1749_p4, %p1743_p1 }
  0x64   :  { %1753 = shalt.err (!%p1750_p5)
}
  0x65   :  { %79 = dma.hbm_to_vmem [thread:$0]  %s2080_s4, 1024, %s1969_s20, [#allocation9], %s1834_s21, %s1834_s21, %s1835_s22  }
  0x66   :  { %s1840_s16 = smov [#allocation13]   ;;  %s1841_s19 = smov [#allocation14]  }
  0x67   :  { %s97_s18 = sshll.u32 %s1840_s16, 4  ;;  %s109_s23 = sshll.u32 %s1841_s19, 4  ;;  %s98_s18 = int_to_ptr.vmem [resolvable:$true] %s97_s18  ;;  %s2006_s23 = int_to_ptr.vmem [resolvable:$true] %s109_s23 }
  0x68   :  { %s1754_s26 = scalar_lea.hbm %s2082_s6, 1024 }
  0x69   :  { %p1755_p6 = scmp.ne.s32.totalorder %s2082_s6, %s1754_s26  ;;  %p1758_p7 = scmp.lt.u32.totalorder %s1754_s26, %s2082_s6 }
  0x6b   :  { %p1760_p8 = pnand %p1758_p7, %p1755_p6 }
  0x6d   :  { %1763 = shalt.err (!%p1760_p8)
}
  0x6e   :  { %s1764_s4 = scalar_lea.vmem %s98_s18, 1024  ;;  %p1769_p10 = scmp.lt.s32.totalorder %s98_s18, %s98_s18 }
  0x6f   :  { %p1765_p9 = scmp.ne.s32.totalorder %s98_s18, %s1764_s4  ;;  %p1770_p11 = scmp.lt.s32.totalorder %s1764_s4, %s1764_s4 }
  0x71   :  { %p1771_p12 = por %p1770_p11, %p1769_p10 }
  0x73   :  { %p1772_p13 = pnand %p1771_p12, %p1765_p9 }
  0x75   :  { %1775 = shalt.err (!%p1772_p13)
}
  0x76   :  { %103 = dma.hbm_to_vmem [thread:$0]  %s2082_s6, 1024, %s98_s18, [#allocation12], %s1834_s21, %s1834_s21, %s1835_s22  }
  0x77   :  { %s1776_s30 = scalar_lea.hbm %s2083_s7, 1024 }
  0x78   :  { %p1777_p0 = scmp.ne.s32.totalorder %s2083_s7, %s1776_s30  ;;  %p1780_p1 = scmp.lt.u32.totalorder %s1776_s30, %s2083_s7 }
  0x7a   :  { %p1782_p2 = pnand %p1780_p1, %p1777_p0 }
  0x7c   :  { %1785 = shalt.err (!%p1782_p2)
}
  0x7d   :  { %s1786_s14 = scalar_lea.vmem %s2006_s23, 1024  ;;  %p1791_p4 = scmp.lt.s32.totalorder %s2006_s23, %s2006_s23 }
  0x7e   :  { %p1787_p3 = scmp.ne.s32.totalorder %s2006_s23, %s1786_s14  ;;  %p1792_p5 = scmp.lt.s32.totalorder %s1786_s14, %s1786_s14 }
  0x80   :  { %p1793_p6 = por %p1792_p5, %p1791_p4 }
  0x82   :  { %p1794_p7 = pnand %p1793_p6, %p1787_p3 }
  0x84   :  { %1797 = shalt.err (!%p1794_p7)
}
  0x85   :  { %115 = dma.hbm_to_vmem [thread:$0]  %s2083_s7, 1024, %s2006_s23, [#allocation15], %s1834_s21, %s1834_s21, %s1835_s22  }
  0x86   :  { %1820 = dma.done.wait [#allocation3], 512  }
  0x87   :  { %1821 = vsyncadd [#allocation3], 4294966784 }
  0x88   :  { %1822 = dma.done.wait [#allocation6], 2048  }
  0x89   :  { %1823 = vsyncadd [#allocation6], 4294965248 }
  0x8a   :  { %1824 = dma.done.wait [#allocation9], 2048  }
  0x8b   :  { %1825 = vsyncadd [#allocation9], 4294965248 }
  0x8c   :  { %1826 = dma.done.wait [#allocation12], 2048  }
  0x8d   :  { %1827 = vsyncadd [#allocation12], 4294965248 }
  0x8e   :  { %1828 = dma.done.wait [#allocation15], 1024  }
  0x8f   :  { %1829 = vsyncadd [#allocation15], 4294966272  ;;  %v1562_v0 = vld [vmem:[#allocation5] sm:$0xff]   ;;  %v1563_v1 = vld [vmem:[#allocation5 + $0x8] sm:$0xff]   ;;  %s1842_s27 = smov [#allocation16]  }
  0x90   :  { %1365 = vmatprep.subr.bf16.mxu0 %v1562_v0  ;;  %v1564_v2 = vld [vmem:[#allocation5 + $0x10] sm:$0xff]   ;;  %v1565_v3 = vld [vmem:[#allocation5 + $0x18] sm:$0xff]   ;;  %v1570_v4 = vld [vmem:[#allocation2] sm:$0xff]   ;;  %s1198_s0 = sshll.u32 %s1842_s27, 4  ;;  %s1199_s0 = int_to_ptr.vmem [resolvable:$true] %s1198_s0 }
  0x91   :  { %1366 = vmatpush3.bf16.msra.mxu0 %v1562_v0  ;;  %1381 = vmatprep.mubr.bf16.mxu0 %v1570_v4  ;;  %v1566_v5 = vld [vmem:[#allocation5 + $0x20] sm:$0xff]   ;;  %v1575_v7 = vld [vmem:[#allocation7 + $0x8] sm:$0xff]   ;;  %v1576_v9 = vld [vmem:[#allocation7 + $0x10] sm:$0xff]   ;;  %p1803_p9 = scmp.lt.s32.totalorder %s1199_s0, %s1199_s0 }
  0x92   :  { %1367 = vmatprep.subr.bf16.mxu0 %v1563_v1  ;;  %v1574_v6 = vld [vmem:[#allocation7] sm:$0xff]   ;;  %v1567_v8 = vld [vmem:[#allocation5 + $0x28] sm:$0xff]   ;;  %v1568_v10 = vld [vmem:[#allocation5 + $0x30] sm:$0xff]  }
  0x93   :  { %1389 = vmatprep.subr.bf16.mxu1 %v1574_v6  ;;  %v1577_v11 = vld [vmem:[#allocation7 + $0x18] sm:$0xff]   ;;  %v1578_v13 = vld [vmem:[#allocation7 + $0x20] sm:$0xff]   ;;  %v1579_v14 = vld [vmem:[#allocation7 + $0x28] sm:$0xff]  }
  0x94   :  { %1390 = vmatpush3.bf16.msra.mxu1 %v1574_v6  ;;  %v1569_v12 = vld [vmem:[#allocation5 + $0x38] sm:$0xff]   ;;  %v1571_v15 = vld [vmem:[#allocation2 + $0x8] sm:$0xff]   ;;  %v1572_v16 = vld [vmem:[#allocation2 + $0x10] sm:$0xff]  }
  0x95   :  { %1368 = vmatpush3.bf16.msra.mxu0 %v1563_v1  ;;  %1391 = vmatprep.subr.bf16.mxu1 %v1575_v7  ;;  %v1573_v17 = vld [vmem:[#allocation2 + $0x18] sm:$0xff]   ;;  %v1580_v18 = vld [vmem:[#allocation7 + $0x30] sm:$0xff]   ;;  %v1582_v20 = vld [vmem:[#allocation8] sm:$0xff]  }
  0x96   :  { %1369 = vmatprep.subr.bf16.mxu0 %v1564_v2  ;;  %v1581_v19 = vld [vmem:[#allocation7 + $0x38] sm:$0xff]   ;;  %v1583_v21 = vld [vmem:[#allocation8 + $0x8] sm:$0xff]   ;;  %v1584_v22 = vld [vmem:[#allocation8 + $0x10] sm:$0xff]  }
  0x97   :  { %v1585_v23 = vld [vmem:[#allocation8 + $0x18] sm:$0xff]   ;;  %v1586_v24 = vld [vmem:[#allocation8 + $0x20] sm:$0xff]   ;;  %v1587_v25 = vld [vmem:[#allocation8 + $0x28] sm:$0xff]  }
  0x98   :  { %1392 = vmatpush3.bf16.msra.mxu1 %v1575_v7  ;;  %v1214_v26 = vld [vmem:[%s2084_s8] ss:$0 sm:$0xff]  ;;  %v1588_v55 = vld [vmem:[#allocation8 + $0x30] sm:$0xff]   ;;  %v1589_v56 = vld [vmem:[#allocation8 + $0x38] sm:$0xff]  }
  0x99   :  { %1370 = vmatpush3.bf16.msra.mxu0 %v1564_v2  ;;  %1393 = vmatprep.subr.bf16.mxu1 %v1576_v9  ;;  %v1590_v57 = vld [vmem:[#allocation10] sm:$0xff]   ;;  %v1591_v58 = vld [vmem:[#allocation10 + $0x8] sm:$0xff]   ;;  %v1592_v59 = vld [vmem:[#allocation10 + $0x10] sm:$0xff]  }
  0x9a   :  { %1371 = vmatprep.subr.bf16.mxu0 %v1565_v3  ;;  %v1593_v60 = vld [vmem:[#allocation10 + $0x18] sm:$0xff]   ;;  %v1594_v61 = vld [vmem:[#allocation10 + $0x20] sm:$0xff]   ;;  %v1595_v62 = vld [vmem:[#allocation10 + $0x28] sm:$0xff]  }
  0x9b   :  { %v1227_v63 = vld [vmem:[%s2084_s8 + $0x1] ss:$0 sm:$0xff] }
  0x9c   :  { %1394 = vmatpush3.bf16.msra.mxu1 %v1576_v9 }
  0x9d   :  { %1372 = vmatpush3.bf16.msra.mxu0 %v1565_v3  ;;  %1395 = vmatprep.subr.bf16.mxu1 %v1577_v11 }
  0x9e   :  { %1373 = vmatprep.subr.bf16.mxu0 %v1566_v5 }
  0xa0   :  { %1396 = vmatpush3.bf16.msra.mxu1 %v1577_v11 }
  0xa1   :  { %1374 = vmatpush3.bf16.msra.mxu0 %v1566_v5  ;;  %1397 = vmatprep.subr.bf16.mxu1 %v1578_v13 }
  0xa2   :  { %1375 = vmatprep.subr.bf16.mxu0 %v1567_v8 }
  0xa4   :  { %1398 = vmatpush3.bf16.msra.mxu1 %v1578_v13 }
  0xa5   :  { %1376 = vmatpush3.bf16.msra.mxu0 %v1567_v8  ;;  %1399 = vmatprep.subr.bf16.mxu1 %v1579_v14 }
  0xa6   :  { %1377 = vmatprep.subr.bf16.mxu0 %v1568_v10 }
  0xa8   :  { %1400 = vmatpush3.bf16.msra.mxu1 %v1579_v14 }
  0xa9   :  { %1378 = vmatpush3.bf16.msra.mxu0 %v1568_v10  ;;  %1401 = vmatprep.subr.bf16.mxu1 %v1580_v18 }
  0xaa   :  { %1379 = vmatprep.subr.bf16.mxu0 %v1569_v12 }
  0xac   :  { %1402 = vmatpush3.bf16.msra.mxu1 %v1580_v18 }
  0xad   :  { %1380 = vmatpush3.bf16.msra.mxu0 %v1569_v12  ;;  %1403 = vmatprep.subr.bf16.mxu1 %v1581_v19 }
  0xae   :  { %1413 = vmatprep.subr.bf16.mxu0 %v1582_v20 }
  0xb0   :  { %1382 = vmatmul.mubr.bf16.vlgmr.msra.gmra.mrb[0].mxu0 %v1571_v15  ;;  %1404 = vmatpush3.bf16.msra.mxu1 %v1581_v19 }
  0xb1   :  { %1385 = vmatprep.mubr.bf16.mxu0 %v1572_v16  ;;  %1414 = vmatpush3.bf16.msra.mxu0 %v1582_v20 }
  0xb2   :  { %1415 = vmatprep.subr.bf16.mxu0 %v1583_v21  ;;  %1437 = vmatprep.subr.bf16.mxu1 %v1590_v57 }
  0xb5   :  { %1416 = vmatpush3.bf16.msra.mxu0 %v1583_v21 }
  0xb6   :  { %1417 = vmatprep.subr.bf16.mxu0 %v1584_v22 }
  0xb8   :  { %1386 = vmatmul.mubr.bf16.gmra.mrb[4].mxu0 %v1573_v17 }
  0xb9   :  { %1418 = vmatpush3.bf16.msra.mxu0 %v1584_v22 }
  0xba   :  { %1419 = vmatprep.subr.bf16.mxu0 %v1585_v23 }
  0xbd   :  { %1420 = vmatpush3.bf16.msra.mxu0 %v1585_v23 }
  0xbe   :  { %1421 = vmatprep.subr.bf16.mxu0 %v1586_v24 }
  0xc1   :  { %1422 = vmatpush3.bf16.msra.mxu0 %v1586_v24 }
  0xc2   :  { %1423 = vmatprep.subr.bf16.mxu0 %v1587_v25 }
  0xc5   :  { %1424 = vmatpush3.bf16.msra.mxu0 %v1587_v25 }
  0xc6   :  { %1425 = vmatprep.subr.bf16.mxu0 %v1588_v55 }
  0xc9   :  { %1426 = vmatpush3.bf16.msra.mxu0 %v1588_v55 }
  0xca   :  { %1427 = vmatprep.subr.bf16.mxu0 %v1589_v56 }
  0xcd   :  { %1428 = vmatpush3.bf16.msra.mxu0 %v1589_v56 }
 0x183   :  { %v1383_v27 = vpop.f32.mrb[0].mxu0 }
 0x184   :  { %v287_v28 = vadd.f32 %v1383_v27, %v1214_v26  ;;  %v278_v29 = vpop.f32.mrb[1].mxu0 }
 0x185   :  { %v279_v30 = vadd.f32 %v1214_v26, %v278_v29  ;;  %v1384_v31 = vpop.f32.mrb[2].mxu0  ;;  %v1597_v29 = vld [vmem:[#allocation10 + $0x38] sm:$0xff]  }
 0x186   :  { %v290_v32 = vadd.f32 %v1384_v31, %v1214_v26  ;;  %v281_v33 = vpop.f32.mrb[3].mxu0  ;;  %v311_v35 = vmax.f32 %v287_v28, 0.0  ;;  %v1596_v28 = vld [vmem:[#allocation10 + $0x30] sm:$0xff]   ;;  %v1599_v31 = vld [vmem:[#allocation11 + $0x8] sm:$0xff]  }
 0x187   :  { %v282_v34 = vadd.f32 %v1214_v26, %v281_v33  ;;  %v309_v37 = vmax.f32 %v279_v30, 0.0  ;;  %v1598_v30 = vld [vmem:[#allocation11] sm:$0xff]   ;;  %v1601_v33 = vld [vmem:[#allocation11 + $0x18] sm:$0xff]  }
 0x188   :  { %v312_v36 = vmax.f32 %v290_v32, 0.0  ;;  %1461 = vmatprep.subr.bf16.mxu0 %v1598_v30  ;;  %v1600_v32 = vld [vmem:[#allocation11 + $0x10] sm:$0xff]  }
 0x189   :  { %v310_v38 = vmax.f32 %v282_v34, 0.0  ;;  %v1602_v34 = vld [vmem:[#allocation11 + $0x20] sm:$0xff]  }
 0x18a   :  { %v334_v39 = vpack.c.bf16 %v312_v36, %v311_v35  ;;  %v1603_v35 = vld [vmem:[#allocation11 + $0x28] sm:$0xff]   ;;  %v1236_v36 = vld [vmem:[%s2084_s8 + $0x2] ss:$0 sm:$0xff] }
 0x18b   :  { %v1387_v40 = vpop.f32.mrb[4].mxu0  ;;  %v333_v41 = vpack.c.bf16 %v310_v38, %v309_v37 }
 0x18c   :  { %v303_v42 = vadd.f32 %v1387_v40, %v1214_v26  ;;  %v294_v43 = vpop.f32.mrb[5].mxu0 }
 0x18d   :  { %v295_v44 = vadd.f32 %v1214_v26, %v294_v43  ;;  %v1388_v45 = vpop.f32.mrb[6].mxu0  ;;  %1405 = vmatprep.mubr.bf16.mxu1 %v333_v41 }
 0x18e   :  { %v306_v46 = vadd.f32 %v1388_v45, %v1214_v26  ;;  %v297_v47 = vpop.f32.mrb[7].mxu0  ;;  %1406 = vmatmul.mubr.bf16.vlgmr.msra.gmra.mrb[0].mxu1 %v334_v39  ;;  %v315_v49 = vmax.f32 %v303_v42, 0.0 }
 0x18f   :  { %v298_v48 = vadd.f32 %v1214_v26, %v297_v47  ;;  %v313_v51 = vmax.f32 %v295_v44, 0.0  ;;  %1438 = vmatpush3.bf16.msra.mxu1 %v1590_v57 }
 0x190   :  { %v316_v50 = vmax.f32 %v306_v46, 0.0  ;;  %1439 = vmatprep.subr.bf16.mxu1 %v1591_v58 }
 0x191   :  { %v314_v52 = vmax.f32 %v298_v48, 0.0 }
 0x192   :  { %v336_v53 = vpack.c.bf16 %v316_v50, %v315_v49 }
 0x193   :  { %v335_v54 = vpack.c.bf16 %v314_v52, %v313_v51  ;;  %1440 = vmatpush3.bf16.msra.mxu1 %v1591_v58 }
 0x194   :  { %1441 = vmatprep.subr.bf16.mxu1 %v1592_v59 }
 0x195   :  { %1409 = vmatprep.mubr.bf16.mxu1 %v335_v54 }
 0x196   :  { %1410 = vmatmul.mubr.bf16.gmra.mrb[4].mxu1 %v336_v53 }
 0x197   :  { %1442 = vmatpush3.bf16.msra.mxu1 %v1592_v59 }
 0x198   :  { %1443 = vmatprep.subr.bf16.mxu1 %v1593_v60 }
 0x19b   :  { %1444 = vmatpush3.bf16.msra.mxu1 %v1593_v60 }
 0x19c   :  { %1445 = vmatprep.subr.bf16.mxu1 %v1594_v61 }
 0x19f   :  { %1446 = vmatpush3.bf16.msra.mxu1 %v1594_v61 }
 0x1a0   :  { %1447 = vmatprep.subr.bf16.mxu1 %v1595_v62 }
 0x1a3   :  { %1448 = vmatpush3.bf16.msra.mxu1 %v1595_v62 }
 0x1a4   :  { %1449 = vmatprep.subr.bf16.mxu1 %v1596_v28 }
 0x1a7   :  { %1450 = vmatpush3.bf16.msra.mxu1 %v1596_v28 }
 0x1a8   :  { %1451 = vmatprep.subr.bf16.mxu1 %v1597_v29 }
 0x1ab   :  { %1452 = vmatpush3.bf16.msra.mxu1 %v1597_v29 }
 0x261   :  { %v1407_v0 = vpop.f32.mrb[0].mxu1 }
 0x262   :  { %v433_v1 = vadd.f32 %v1407_v0, %v1227_v63  ;;  %v424_v2 = vpop.f32.mrb[1].mxu1 }
 0x263   :  { %v425_v3 = vadd.f32 %v1227_v63, %v424_v2  ;;  %v1408_v4 = vpop.f32.mrb[2].mxu1  ;;  %v1605_v2 = vld [vmem:[#allocation11 + $0x38] sm:$0xff]  }
 0x264   :  { %v436_v5 = vadd.f32 %v1408_v4, %v1227_v63  ;;  %v427_v6 = vpop.f32.mrb[3].mxu1  ;;  %v457_v8 = vmax.f32 %v433_v1, 0.0  ;;  %v1604_v1 = vld [vmem:[#allocation11 + $0x30] sm:$0xff]   ;;  %v1607_v4 = vld [vmem:[#allocation13 + $0x8] sm:$0xff]  }
 0x265   :  { %v428_v7 = vadd.f32 %v1227_v63, %v427_v6  ;;  %v455_v10 = vmax.f32 %v425_v3, 0.0  ;;  %v1606_v3 = vld [vmem:[#allocation13] sm:$0xff]   ;;  %v1609_v6 = vld [vmem:[#allocation13 + $0x18] sm:$0xff]  }
 0x266   :  { %v458_v9 = vmax.f32 %v436_v5, 0.0  ;;  %1485 = vmatprep.subr.bf16.mxu1 %v1606_v3  ;;  %v1608_v5 = vld [vmem:[#allocation13 + $0x10] sm:$0xff]  }
 0x267   :  { %v456_v11 = vmax.f32 %v428_v7, 0.0  ;;  %v1610_v7 = vld [vmem:[#allocation13 + $0x20] sm:$0xff]  }
 0x268   :  { %v480_v12 = vpack.c.bf16 %v458_v9, %v457_v8  ;;  %v1611_v8 = vld [vmem:[#allocation13 + $0x28] sm:$0xff]   ;;  %v1245_v9 = vld [vmem:[%s2084_s8 + $0x3] ss:$0 sm:$0xff] }
 0x269   :  { %v479_v13 = vpack.c.bf16 %v456_v11, %v455_v10  ;;  %v1411_v14 = vpop.f32.mrb[4].mxu1 }
 0x26a   :  { %v449_v15 = vadd.f32 %v1411_v14, %v1227_v63  ;;  %v440_v16 = vpop.f32.mrb[5].mxu1 }
 0x26b   :  { %v441_v17 = vadd.f32 %v1227_v63, %v440_v16  ;;  %v1412_v18 = vpop.f32.mrb[6].mxu1  ;;  %1429 = vmatprep.mubr.bf16.mxu0 %v479_v13 }
 0x26c   :  { %v452_v19 = vadd.f32 %v1412_v18, %v1227_v63  ;;  %v443_v20 = vpop.f32.mrb[7].mxu1  ;;  %1430 = vmatmul.mubr.bf16.vlgmr.msra.gmra.mrb[8].mxu0 %v480_v12  ;;  %v461_v22 = vmax.f32 %v449_v15, 0.0 }
 0x26d   :  { %v444_v21 = vadd.f32 %v1227_v63, %v443_v20  ;;  %v459_v24 = vmax.f32 %v441_v17, 0.0  ;;  %1462 = vmatpush3.bf16.msra.mxu0 %v1598_v30 }
 0x26e   :  { %v462_v23 = vmax.f32 %v452_v19, 0.0  ;;  %1463 = vmatprep.subr.bf16.mxu0 %v1599_v31 }
 0x26f   :  { %v460_v25 = vmax.f32 %v444_v21, 0.0 }
 0x270   :  { %v482_v26 = vpack.c.bf16 %v462_v23, %v461_v22 }
 0x271   :  { %v481_v27 = vpack.c.bf16 %v460_v25, %v459_v24  ;;  %1464 = vmatpush3.bf16.msra.mxu0 %v1599_v31 }
 0x272   :  { %1465 = vmatprep.subr.bf16.mxu0 %v1600_v32 }
 0x273   :  { %1433 = vmatprep.mubr.bf16.mxu0 %v481_v27 }
 0x274   :  { %1434 = vmatmul.mubr.bf16.gmra.mrb[12].mxu0 %v482_v26 }
 0x275   :  { %1466 = vmatpush3.bf16.msra.mxu0 %v1600_v32 }
 0x276   :  { %1467 = vmatprep.subr.bf16.mxu0 %v1601_v33 }
 0x279   :  { %1468 = vmatpush3.bf16.msra.mxu0 %v1601_v33 }
 0x27a   :  { %1469 = vmatprep.subr.bf16.mxu0 %v1602_v34 }
 0x27d   :  { %1470 = vmatpush3.bf16.msra.mxu0 %v1602_v34 }
 0x27e   :  { %1471 = vmatprep.subr.bf16.mxu0 %v1603_v35 }
 0x281   :  { %1472 = vmatpush3.bf16.msra.mxu0 %v1603_v35 }
 0x282   :  { %1473 = vmatprep.subr.bf16.mxu0 %v1604_v1 }
 0x285   :  { %1474 = vmatpush3.bf16.msra.mxu0 %v1604_v1 }
 0x286   :  { %1475 = vmatprep.subr.bf16.mxu0 %v1605_v2 }
 0x289   :  { %1476 = vmatpush3.bf16.msra.mxu0 %v1605_v2 }
 0x33f   :  { %v1431_v37 = vpop.f32.mrb[8].mxu0 }
 0x340   :  { %v579_v38 = vadd.f32 %v1431_v37, %v1236_v36  ;;  %v570_v39 = vpop.f32.mrb[9].mxu0 }
 0x341   :  { %v571_v40 = vadd.f32 %v1236_v36, %v570_v39  ;;  %v1432_v41 = vpop.f32.mrb[10].mxu0  ;;  %v1613_v39 = vld [vmem:[#allocation13 + $0x38] sm:$0xff]  }
 0x342   :  { %v582_v42 = vadd.f32 %v1432_v41, %v1236_v36  ;;  %v573_v43 = vpop.f32.mrb[11].mxu0  ;;  %v603_v45 = vmax.f32 %v579_v38, 0.0  ;;  %v1612_v38 = vld [vmem:[#allocation13 + $0x30] sm:$0xff]   ;;  %v1615_v41 = vld [vmem:[#allocation14 + $0x8] sm:$0xff]  }
 0x343   :  { %v574_v44 = vadd.f32 %v1236_v36, %v573_v43  ;;  %v601_v47 = vmax.f32 %v571_v40, 0.0  ;;  %v1614_v40 = vld [vmem:[#allocation14] sm:$0xff]   ;;  %v1617_v43 = vld [vmem:[#allocation14 + $0x18] sm:$0xff]  }
 0x344   :  { %v604_v46 = vmax.f32 %v582_v42, 0.0  ;;  %1509 = vmatprep.subr.bf16.mxu0 %v1614_v40  ;;  %v1616_v42 = vld [vmem:[#allocation14 + $0x10] sm:$0xff]  }
 0x345   :  { %v602_v48 = vmax.f32 %v574_v44, 0.0  ;;  %v1618_v44 = vld [vmem:[#allocation14 + $0x20] sm:$0xff]  }
 0x346   :  { %v626_v49 = vpack.c.bf16 %v604_v46, %v603_v45  ;;  %v1619_v45 = vld [vmem:[#allocation14 + $0x28] sm:$0xff]   ;;  %v1254_v46 = vld [vmem:[%s2084_s8 + $0x4] ss:$0 sm:$0xff] }
 0x347   :  { %v625_v50 = vpack.c.bf16 %v602_v48, %v601_v47  ;;  %v1435_v51 = vpop.f32.mrb[12].mxu0 }
 0x348   :  { %v595_v52 = vadd.f32 %v1435_v51, %v1236_v36  ;;  %v586_v53 = vpop.f32.mrb[13].mxu0 }
 0x349   :  { %v587_v54 = vadd.f32 %v1236_v36, %v586_v53  ;;  %v1436_v55 = vpop.f32.mrb[14].mxu0  ;;  %1453 = vmatprep.mubr.bf16.mxu1 %v625_v50 }
 0x34a   :  { %v598_v56 = vadd.f32 %v1436_v55, %v1236_v36  ;;  %v589_v57 = vpop.f32.mrb[15].mxu0  ;;  %1454 = vmatmul.mubr.bf16.vlgmr.msra.gmra.mrb[8].mxu1 %v626_v49  ;;  %v607_v59 = vmax.f32 %v595_v52, 0.0 }
 0x34b   :  { %v590_v58 = vadd.f32 %v1236_v36, %v589_v57  ;;  %v605_v61 = vmax.f32 %v587_v54, 0.0  ;;  %1486 = vmatpush3.bf16.msra.mxu1 %v1606_v3 }
 0x34c   :  { %v608_v60 = vmax.f32 %v598_v56, 0.0  ;;  %1487 = vmatprep.subr.bf16.mxu1 %v1607_v4 }
 0x34d   :  { %v606_v62 = vmax.f32 %v590_v58, 0.0 }
 0x34e   :  { %v628_v63 = vpack.c.bf16 %v608_v60, %v607_v59 }
 0x34f   :  { %v627_v0 = vpack.c.bf16 %v606_v62, %v605_v61  ;;  %1488 = vmatpush3.bf16.msra.mxu1 %v1607_v4 }
 0x350   :  { %1489 = vmatprep.subr.bf16.mxu1 %v1608_v5 }
 0x351   :  { %1457 = vmatprep.mubr.bf16.mxu1 %v627_v0 }
 0x352   :  { %1458 = vmatmul.mubr.bf16.gmra.mrb[12].mxu1 %v628_v63 }
 0x353   :  { %1490 = vmatpush3.bf16.msra.mxu1 %v1608_v5 }
 0x354   :  { %1491 = vmatprep.subr.bf16.mxu1 %v1609_v6 }
 0x357   :  { %1492 = vmatpush3.bf16.msra.mxu1 %v1609_v6 }
 0x358   :  { %1493 = vmatprep.subr.bf16.mxu1 %v1610_v7 }
 0x35b   :  { %1494 = vmatpush3.bf16.msra.mxu1 %v1610_v7 }
 0x35c   :  { %1495 = vmatprep.subr.bf16.mxu1 %v1611_v8 }
 0x35f   :  { %1496 = vmatpush3.bf16.msra.mxu1 %v1611_v8 }
 0x360   :  { %1497 = vmatprep.subr.bf16.mxu1 %v1612_v38 }
 0x363   :  { %1498 = vmatpush3.bf16.msra.mxu1 %v1612_v38 }
 0x364   :  { %1499 = vmatprep.subr.bf16.mxu1 %v1613_v39 }
 0x367   :  { %1500 = vmatpush3.bf16.msra.mxu1 %v1613_v39 }
 0x368   :  { %1533 = vmatprep.subr.bf16.mxu1 %v1614_v40 }
 0x41d   :  { %v1455_v10 = vpop.f32.mrb[8].mxu1 }
 0x41e   :  { %v725_v11 = vadd.f32 %v1455_v10, %v1245_v9  ;;  %v716_v12 = vpop.f32.mrb[9].mxu1 }
 0x41f   :  { %v717_v13 = vadd.f32 %v1245_v9, %v716_v12  ;;  %v1456_v14 = vpop.f32.mrb[10].mxu1  ;;  %v1621_v12 = vld [vmem:[#allocation14 + $0x38] sm:$0xff]  }
 0x420   :  { %v728_v15 = vadd.f32 %v1456_v14, %v1245_v9  ;;  %v719_v16 = vpop.f32.mrb[11].mxu1  ;;  %v749_v18 = vmax.f32 %v725_v11, 0.0  ;;  %v1620_v11 = vld [vmem:[#allocation14 + $0x30] sm:$0xff]  }
 0x421   :  { %v720_v17 = vadd.f32 %v1245_v9, %v719_v16  ;;  %v747_v20 = vmax.f32 %v717_v13, 0.0  ;;  %v1263_v13 = vld [vmem:[%s2084_s8 + $0x5] ss:$0 sm:$0xff] }
 0x422   :  { %v750_v19 = vmax.f32 %v728_v15, 0.0 }
 0x423   :  { %v748_v21 = vmax.f32 %v720_v17, 0.0 }
 0x424   :  { %v772_v22 = vpack.c.bf16 %v750_v19, %v749_v18 }
 0x425   :  { %v771_v23 = vpack.c.bf16 %v748_v21, %v747_v20  ;;  %v1459_v24 = vpop.f32.mrb[12].mxu1 }
 0x426   :  { %v741_v25 = vadd.f32 %v1459_v24, %v1245_v9  ;;  %v732_v26 = vpop.f32.mrb[13].mxu1 }
 0x427   :  { %v733_v27 = vadd.f32 %v1245_v9, %v732_v26  ;;  %v1460_v28 = vpop.f32.mrb[14].mxu1  ;;  %1477 = vmatprep.mubr.bf16.mxu0 %v771_v23 }
 0x428   :  { %v744_v29 = vadd.f32 %v1460_v28, %v1245_v9  ;;  %v735_v30 = vpop.f32.mrb[15].mxu1  ;;  %1478 = vmatmul.mubr.bf16.vlgmr.msra.gmra.mrb[16].mxu0 %v772_v22  ;;  %v753_v32 = vmax.f32 %v741_v25, 0.0 }
 0x429   :  { %v736_v31 = vadd.f32 %v1245_v9, %v735_v30  ;;  %v751_v34 = vmax.f32 %v733_v27, 0.0  ;;  %1510 = vmatpush3.bf16.msra.mxu0 %v1614_v40 }
 0x42a   :  { %v754_v33 = vmax.f32 %v744_v29, 0.0  ;;  %1511 = vmatprep.subr.bf16.mxu0 %v1615_v41 }
 0x42b   :  { %v752_v35 = vmax.f32 %v736_v31, 0.0 }
 0x42c   :  { %v774_v36 = vpack.c.bf16 %v754_v33, %v753_v32 }
 0x42d   :  { %v773_v37 = vpack.c.bf16 %v752_v35, %v751_v34  ;;  %1512 = vmatpush3.bf16.msra.mxu0 %v1615_v41 }
 0x42e   :  { %1513 = vmatprep.subr.bf16.mxu0 %v1616_v42 }
 0x42f   :  { %1481 = vmatprep.mubr.bf16.mxu0 %v773_v37 }
 0x430   :  { %1482 = vmatmul.mubr.bf16.gmra.mrb[20].mxu0 %v774_v36 }
 0x431   :  { %1514 = vmatpush3.bf16.msra.mxu0 %v1616_v42 }
 0x432   :  { %1515 = vmatprep.subr.bf16.mxu0 %v1617_v43 }
 0x435   :  { %1516 = vmatpush3.bf16.msra.mxu0 %v1617_v43 }
 0x436   :  { %1517 = vmatprep.subr.bf16.mxu0 %v1618_v44 }
 0x439   :  { %1518 = vmatpush3.bf16.msra.mxu0 %v1618_v44 }
 0x43a   :  { %1519 = vmatprep.subr.bf16.mxu0 %v1619_v45 }
 0x43d   :  { %1520 = vmatpush3.bf16.msra.mxu0 %v1619_v45 }
 0x43e   :  { %1521 = vmatprep.subr.bf16.mxu0 %v1620_v11 }
 0x441   :  { %1522 = vmatpush3.bf16.msra.mxu0 %v1620_v11 }
 0x442   :  { %1523 = vmatprep.subr.bf16.mxu0 %v1621_v12 }
 0x445   :  { %1524 = vmatpush3.bf16.msra.mxu0 %v1621_v12 }
 0x4fb   :  { %v1479_v47 = vpop.f32.mrb[16].mxu0 }
 0x4fc   :  { %v871_v48 = vadd.f32 %v1479_v47, %v1254_v46  ;;  %v862_v49 = vpop.f32.mrb[17].mxu0 }
 0x4fd   :  { %v863_v50 = vadd.f32 %v1254_v46, %v862_v49  ;;  %v1480_v51 = vpop.f32.mrb[18].mxu0 }
 0x4fe   :  { %v874_v52 = vadd.f32 %v1480_v51, %v1254_v46  ;;  %v865_v53 = vpop.f32.mrb[19].mxu0  ;;  %v895_v55 = vmax.f32 %v871_v48, 0.0 }
 0x4ff   :  { %v866_v54 = vadd.f32 %v1254_v46, %v865_v53  ;;  %v893_v57 = vmax.f32 %v863_v50, 0.0 }
 0x500   :  { %v896_v56 = vmax.f32 %v874_v52, 0.0 }
 0x501   :  { %v894_v58 = vmax.f32 %v866_v54, 0.0 }
 0x502   :  { %v918_v59 = vpack.c.bf16 %v896_v56, %v895_v55 }
 0x503   :  { %v917_v60 = vpack.c.bf16 %v894_v58, %v893_v57  ;;  %v1483_v61 = vpop.f32.mrb[20].mxu0 }
 0x504   :  { %v887_v62 = vadd.f32 %v1483_v61, %v1254_v46  ;;  %v878_v63 = vpop.f32.mrb[21].mxu0 }
 0x505   :  { %v879_v0 = vadd.f32 %v1254_v46, %v878_v63  ;;  %v1484_v1 = vpop.f32.mrb[22].mxu0  ;;  %1501 = vmatprep.mubr.bf16.mxu1 %v917_v60 }
 0x506   :  { %v890_v2 = vadd.f32 %v1484_v1, %v1254_v46  ;;  %v881_v3 = vpop.f32.mrb[23].mxu0  ;;  %1502 = vmatmul.mubr.bf16.vlgmr.msra.gmra.mrb[16].mxu1 %v918_v59  ;;  %v899_v5 = vmax.f32 %v887_v62, 0.0 }
 0x507   :  { %v882_v4 = vadd.f32 %v1254_v46, %v881_v3  ;;  %1541 = vmatpush3.bf16.msra.mxu1 %v1614_v40  ;;  %v897_v7 = vmax.f32 %v879_v0, 0.0 }
 0x508   :  { %v900_v6 = vmax.f32 %v890_v2, 0.0  ;;  %1534 = vmatprep.subr.bf16.mxu1 %v1615_v41 }
 0x509   :  { %v898_v8 = vmax.f32 %v882_v4, 0.0 }
 0x50a   :  { %v920_v9 = vpack.c.bf16 %v900_v6, %v899_v5 }
 0x50b   :  { %v919_v10 = vpack.c.bf16 %v898_v8, %v897_v7  ;;  %1542 = vmatpush3.bf16.msra.mxu1 %v1615_v41 }
 0x50c   :  { %1535 = vmatprep.subr.bf16.mxu1 %v1616_v42 }
 0x50d   :  { %1505 = vmatprep.mubr.bf16.mxu1 %v919_v10 }
 0x50e   :  { %1506 = vmatmul.mubr.bf16.gmra.mrb[20].mxu1 %v920_v9 }
 0x50f   :  { %1543 = vmatpush3.bf16.msra.mxu1 %v1616_v42  ;;  %v1272_v42 = vld [vmem:[%s2084_s8 + $0x6] ss:$0 sm:$0xff]  ;;  %s1798_s8 = scalar_lea.vmem %s1199_s0, 1024 }
 0x510   :  { %1536 = vmatprep.subr.bf16.mxu1 %v1617_v43  ;;  %p1799_p8 = scmp.ne.s32.totalorder %s1199_s0, %s1798_s8  ;;  %p1804_p10 = scmp.lt.s32.totalorder %s1798_s8, %s1798_s8 }
 0x512   :  { %p1805_p11 = por %p1804_p10, %p1803_p9 }
 0x513   :  { %1544 = vmatpush3.bf16.msra.mxu1 %v1617_v43 }
 0x514   :  { %1537 = vmatprep.subr.bf16.mxu1 %v1618_v44  ;;  %p1806_p12 = pnand %p1805_p11, %p1799_p8 }
 0x517   :  { %1545 = vmatpush3.bf16.msra.mxu1 %v1618_v44 }
 0x518   :  { %1538 = vmatprep.subr.bf16.mxu1 %v1619_v45 }
 0x51b   :  { %1546 = vmatpush3.bf16.msra.mxu1 %v1619_v45 }
 0x51c   :  { %1539 = vmatprep.subr.bf16.mxu1 %v1620_v11 }
 0x51f   :  { %1547 = vmatpush3.bf16.msra.mxu1 %v1620_v11 }
 0x520   :  { %1540 = vmatprep.subr.bf16.mxu1 %v1621_v12 }
 0x523   :  { %1548 = vmatpush3.bf16.msra.mxu1 %v1621_v12 }
 0x5d9   :  { %v1503_v14 = vpop.f32.mrb[16].mxu1 }
 0x5da   :  { %v1017_v15 = vadd.f32 %v1503_v14, %v1263_v13  ;;  %v1008_v16 = vpop.f32.mrb[17].mxu1 }
 0x5db   :  { %v1009_v17 = vadd.f32 %v1263_v13, %v1008_v16  ;;  %v1504_v18 = vpop.f32.mrb[18].mxu1 }
 0x5dc   :  { %v1020_v19 = vadd.f32 %v1504_v18, %v1263_v13  ;;  %v1011_v20 = vpop.f32.mrb[19].mxu1  ;;  %v1041_v22 = vmax.f32 %v1017_v15, 0.0 }
 0x5dd   :  { %v1012_v21 = vadd.f32 %v1263_v13, %v1011_v20  ;;  %v1039_v24 = vmax.f32 %v1009_v17, 0.0 }
 0x5de   :  { %v1042_v23 = vmax.f32 %v1020_v19, 0.0 }
 0x5df   :  { %v1040_v25 = vmax.f32 %v1012_v21, 0.0 }
 0x5e0   :  { %v1064_v26 = vpack.c.bf16 %v1042_v23, %v1041_v22 }
 0x5e1   :  { %v1063_v27 = vpack.c.bf16 %v1040_v25, %v1039_v24  ;;  %v1507_v28 = vpop.f32.mrb[20].mxu1 }
 0x5e2   :  { %v1033_v29 = vadd.f32 %v1507_v28, %v1263_v13  ;;  %v1024_v30 = vpop.f32.mrb[21].mxu1 }
 0x5e3   :  { %v1025_v31 = vadd.f32 %v1263_v13, %v1024_v30  ;;  %v1508_v32 = vpop.f32.mrb[22].mxu1  ;;  %1525 = vmatprep.mubr.bf16.mxu0 %v1063_v27 }
 0x5e4   :  { %v1036_v33 = vadd.f32 %v1508_v32, %v1263_v13  ;;  %v1027_v34 = vpop.f32.mrb[23].mxu1  ;;  %1526 = vmatmul.mubr.bf16.vlgmr.msra.gmra.mrb[24].mxu0 %v1064_v26  ;;  %v1045_v36 = vmax.f32 %v1033_v29, 0.0 }
 0x5e5   :  { %v1028_v35 = vadd.f32 %v1263_v13, %v1027_v34  ;;  %v1043_v38 = vmax.f32 %v1025_v31, 0.0 }
 0x5e6   :  { %v1046_v37 = vmax.f32 %v1036_v33, 0.0 }
 0x5e7   :  { %v1044_v39 = vmax.f32 %v1028_v35, 0.0 }
 0x5e8   :  { %v1066_v40 = vpack.c.bf16 %v1046_v37, %v1045_v36 }
 0x5e9   :  { %v1065_v41 = vpack.c.bf16 %v1044_v39, %v1043_v38 }
 0x5eb   :  { %1529 = vmatprep.mubr.bf16.mxu1 %v1065_v41 }
 0x5ec   :  { %1530 = vmatmul.mubr.bf16.vlgmr.msra.gmra.mrb[24].mxu1 %v1066_v40 }
 0x6b7   :  { %v1527_v43 = vpop.f32.mrb[24].mxu0 }
 0x6b8   :  { %v1163_v44 = vadd.f32 %v1527_v43, %v1272_v42  ;;  %v1154_v45 = vpop.f32.mrb[25].mxu0 }
 0x6b9   :  { %v1155_v46 = vadd.f32 %v1272_v42, %v1154_v45  ;;  %v1528_v47 = vpop.f32.mrb[26].mxu0 }
 0x6ba   :  { %1187 = vst [vmem:[#allocation16 + $0x10] sm:$0xff] %v1163_v44  ;;  %v1166_v48 = vadd.f32 %v1528_v47, %v1272_v42  ;;  %v1157_v49 = vpop.f32.mrb[27].mxu0 }
 0x6bb   :  { %1185 = vst [vmem:[#allocation16] sm:$0xff] %v1155_v46  ;;  %v1158_v50 = vadd.f32 %v1272_v42, %v1157_v49 }
 0x6bc   :  { %1188 = vst [vmem:[#allocation16 + $0x18] sm:$0xff] %v1166_v48 }
 0x6bd   :  { %1186 = vst [vmem:[#allocation16 + $0x8] sm:$0xff] %v1158_v50 }
 0x6bf   :  { %v1531_v51 = vpop.f32.mrb[24].mxu1 }
 0x6c0   :  { %v1179_v52 = vadd.f32 %v1531_v51, %v1272_v42  ;;  %v1170_v53 = vpop.f32.mrb[25].mxu1 }
 0x6c1   :  { %v1171_v54 = vadd.f32 %v1272_v42, %v1170_v53  ;;  %v1532_v55 = vpop.f32.mrb[26].mxu1 }
 0x6c2   :  { %1191 = vst [vmem:[#allocation16 + $0x30] sm:$0xff] %v1179_v52  ;;  %v1182_v56 = vadd.f32 %v1532_v55, %v1272_v42  ;;  %v1173_v57 = vpop.f32.mrb[27].mxu1 }
 0x6c3   :  { %1189 = vst [vmem:[#allocation16 + $0x20] sm:$0xff] %v1171_v54  ;;  %v1174_v58 = vadd.f32 %v1272_v42, %v1173_v57 }
 0x6c4   :  { %1192 = vst [vmem:[#allocation16 + $0x38] sm:$0xff] %v1182_v56 }
 0x6c5   :  { %1190 = vst [vmem:[#allocation16 + $0x28] sm:$0xff] %v1174_v58 }
 0x6c6   :  { %1809 = shalt.err (!%p1806_p12)
}
 0x6c7   :  { %s1810_s17 = scalar_lea.hbm %s2085_s9, 1024 }
 0x6c8   :  { %p1811_p13 = scmp.ne.s32.totalorder %s2085_s9, %s1810_s17  ;;  %p1814_p0 = scmp.lt.u32.totalorder %s1810_s17, %s2085_s9 }
 0x6ca   :  { %p1816_p1 = pnand %p1814_p0, %p1811_p13 }
 0x6cc   :  { %1819 = shalt.err (!%p1816_p1)
}
 0x6cd   :  { %s1843_s13 = smov 128   ;;  %s1844_s1 = smov 8  }
 0x6ce   :  { %1204 = dma.vmem_to_hbm [thread:$0]  %s1199_s0, 1024, %s2085_s9, [#allocation4], %s1843_s13, %s1843_s13, %s1844_s1  }
 0x6cf   :  { %1830 = dma.done.wait [#allocation4], 1024  }
 0x6d0   :  { %1831 = vsyncadd [#allocation4], 4294966272 }
 0x6d1   :  { %1208 = vsyncpa [#allocation3], 1 }
 0x6d2   :  { %1209 = vsyncpa [#allocation6], 1 }
 0x6d3   :  { %1210 = vsyncpa [#allocation9], 1 }
 0x6d4   :  { %1211 = vsyncpa [#allocation12], 1 }
 0x6d5   :  { %1212 = vsyncpa [#allocation15], 1 }
 0x6d6   :  { %1213 = vsyncpa [#allocation4], 1 }

// kernel: tpu_custom_call.1
= control target key start
LH: loop header
LB: loop body
LE: loop exit
PB: predicated region body
PF: predicated region fallthrough
CT: control target
= control target key end

     0   :  { %14 = vsyncpa [#allocation3], 0  ;;  %s2076_s0 = inlined_call_operand.hbm [shape: bf16[64,128], index: 0, kind: input, shape index: {}]   ;;  %s2077_s1 = inlined_call_operand.hbm [shape: bf16[128,128], index: 1, kind: input, shape index: {}]   ;;  %s2078_s2 = inlined_call_operand.hbm [shape: bf16[128,128], index: 2, kind: input, shape index: {}]   ;;  %s2079_s3 = inlined_call_operand.hbm [shape: bf16[128,128], index: 3, kind: input, shape index: {}]   ;;  %s2080_s4 = inlined_call_operand.hbm [shape: bf16[128,128], index: 4, kind: input, shape index: {}]   ;;  %s2081_s5 = inlined_call_operand.hbm [shape: bf16[128,128], index: 5, kind: input, shape index: {}]   ;;  %s2082_s6 = inlined_call_operand.hbm [shape: bf16[128,128], index: 6, kind: input, shape index: {}]   ;;  %s2083_s7 = inlined_call_operand.hbm [shape: bf16[128,128], index: 7, kind: input, shape index: {}]   ;;  %s2084_s8 = inlined_call_operand.vmem [shape: f32[7,128], index: 8, kind: input, shape index: {}]   ;;  %s2085_s9 = inlined_call_operand.hbm [shape: f32[64,128], index: 9, kind: output, shape index: {}]  }
   0x1   :  { %15 = vsyncpa [#allocation6], 0 }
   0x2   :  { %16 = vsyncpa [#allocation9], 0 }
   0x3   :  { %17 = vsyncpa [#allocation12], 0 }
   0x4   :  { %18 = vsyncpa [#allocation15], 0 }
   0x5   :  { %19 = vsyncpa [#allocation4], 0  ;;  %s1832_s30 = smov [#allocation5]   ;;  %s1833_s11 = smov [#allocation8]  }
   0x6   :  { %s37_s10 = sshll.u32 %s1832_s30, 4  ;;  %s61_s12 = sshll.u32 %s1833_s11, 4  ;;  %s38_s10 = int_to_ptr.vmem [resolvable:$true] %s37_s10  ;;  %s1895_s12 = int_to_ptr.vmem [resolvable:$true] %s61_s12 }
   0x7   :  { %s1622_s15 = scalar_lea.hbm %s2077_s1, 1024 }
   0x8   :  { %p1623_p0 = scmp.ne.s32.totalorder %s2077_s1, %s1622_s15  ;;  %p1626_p1 = scmp.lt.u32.totalorder %s1622_s15, %s2077_s1 }
   0xa   :  { %p1628_p2 = pnand %p1626_p1, %p1623_p0 }
   0xc   :  { %1631 = shalt.err (!%p1628_p2)
}
   0xd   :  { %s1632_s20 = scalar_lea.vmem %s38_s10, 1024  ;;  %p1637_p4 = scmp.lt.s32.totalorder %s38_s10, %s38_s10 }
   0xe   :  { %p1633_p3 = scmp.ne.s32.totalorder %s38_s10, %s1632_s20  ;;  %p1638_p5 = scmp.lt.s32.totalorder %s1632_s20, %s1632_s20 }
  0x10   :  { %p1639_p6 = por %p1638_p5, %p1637_p4 }
  0x12   :  { %p1640_p7 = pnand %p1639_p6, %p1633_p3 }
  0x14   :  { %1643 = shalt.err (!%p1640_p7)
}
  0x15   :  { %s1834_s21 = smov 64   ;;  %s1835_s22 = smov 4  }
  0x16   :  { %43 = dma.hbm_to_vmem [thread:$0]  %s2077_s1, 1024, %s38_s10, [#allocation6], %s1834_s21, %s1834_s21, %s1835_s22  }
  0x17   :  { %s1644_s27 = scalar_lea.hbm %s2079_s3, 1024 }
  0x18   :  { %p1645_p8 = scmp.ne.s32.totalorder %s2079_s3, %s1644_s27  ;;  %p1648_p9 = scmp.lt.u32.totalorder %s1644_s27, %s2079_s3 }
  0x1a   :  { %p1650_p10 = pnand %p1648_p9, %p1645_p8 }
  0x1c   :  { %1653 = shalt.err (!%p1650_p10)
}
  0x1d   :  { %s1654_s13 = scalar_lea.vmem %s1895_s12, 1024  ;;  %p1659_p12 = scmp.lt.s32.totalorder %s1895_s12, %s1895_s12 }
  0x1e   :  { %p1655_p11 = scmp.ne.s32.totalorder %s1895_s12, %s1654_s13  ;;  %p1660_p13 = scmp.lt.s32.totalorder %s1654_s13, %s1654_s13 }
  0x20   :  { %p1661_p0 = por %p1660_p13, %p1659_p12 }
  0x22   :  { %p1662_p1 = pnand %p1661_p0, %p1655_p11 }
  0x24   :  { %1665 = shalt.err (!%p1662_p1)
}
  0x25   :  { %67 = dma.hbm_to_vmem [thread:$0]  %s2079_s3, 1024, %s1895_s12, [#allocation9], %s1834_s21, %s1834_s21, %s1835_s22  }
  0x26   :  { %s1836_s14 = smov [#allocation11]   ;;  %s1837_s16 = smov [#allocation2]  }
  0x27   :  { %s85_s15 = sshll.u32 %s1836_s14, 4  ;;  %s25_s17 = sshll.u32 %s1837_s16, 4  ;;  %s86_s15 = int_to_ptr.vmem [resolvable:$true] %s85_s15  ;;  %s1932_s17 = int_to_ptr.vmem [resolvable:$true] %s25_s17 }
  0x28   :  { %s1666_s20 = scalar_lea.hbm %s2081_s5, 1024 }
  0x29   :  { %p1667_p2 = scmp.ne.s32.totalorder %s2081_s5, %s1666_s20  ;;  %p1670_p3 = scmp.lt.u32.totalorder %s1666_s20, %s2081_s5 }
  0x2b   :  { %p1672_p4 = pnand %p1670_p3, %p1667_p2 }
  0x2d   :  { %1675 = shalt.err (!%p1672_p4)
}
  0x2e   :  { %s1676_s3 = scalar_lea.vmem %s86_s15, 1024  ;;  %p1681_p6 = scmp.lt.s32.totalorder %s86_s15, %s86_s15 }
  0x2f   :  { %p1677_p5 = scmp.ne.s32.totalorder %s86_s15, %s1676_s3  ;;  %p1682_p7 = scmp.lt.s32.totalorder %s1676_s3, %s1676_s3 }
  0x31   :  { %p1683_p8 = por %p1682_p7, %p1681_p6 }
  0x33   :  { %p1684_p9 = pnand %p1683_p8, %p1677_p5 }
  0x35   :  { %1687 = shalt.err (!%p1684_p9)
}
  0x36   :  { %91 = dma.hbm_to_vmem [thread:$0]  %s2081_s5, 1024, %s86_s15, [#allocation12], %s1834_s21, %s1834_s21, %s1835_s22  }
  0x37   :  { %s1688_s30 = scalar_lea.hbm %s2076_s0, 512 }
  0x38   :  { %p1689_p10 = scmp.ne.s32.totalorder %s2076_s0, %s1688_s30  ;;  %p1692_p11 = scmp.lt.u32.totalorder %s1688_s30, %s2076_s0 }
  0x3a   :  { %p1694_p12 = pnand %p1692_p11, %p1689_p10 }
  0x3c   :  { %1697 = shalt.err (!%p1694_p12)
}
  0x3d   :  { %s1698_s14 = scalar_lea.vmem %s1932_s17, 512  ;;  %p1703_p0 = scmp.lt.s32.totalorder %s1932_s17, %s1932_s17 }
  0x3e   :  { %p1699_p13 = scmp.ne.s32.totalorder %s1932_s17, %s1698_s14  ;;  %p1704_p1 = scmp.lt.s32.totalorder %s1698_s14, %s1698_s14 }
  0x40   :  { %p1705_p2 = por %p1704_p1, %p1703_p0 }
  0x42   :  { %p1706_p3 = pnand %p1705_p2, %p1699_p13 }
  0x44   :  { %1709 = shalt.err (!%p1706_p3)
}
  0x45   :  { %31 = dma.hbm_to_vmem [thread:$0]  %s2076_s0, 512, %s1932_s17, [#allocation3], %s1834_s21, %s1834_s21, %s1835_s22  }
  0x46   :  { %s1838_s16 = smov [#allocation7]   ;;  %s1839_s19 = smov [#allocation10]  }
  0x47   :  { %s49_s18 = sshll.u32 %s1838_s16, 4  ;;  %s73_s20 = sshll.u32 %s1839_s19, 4  ;;  %s50_s18 = int_to_ptr.vmem [resolvable:$true] %s49_s18  ;;  %s1969_s20 = int_to_ptr.vmem [resolvable:$true] %s73_s20 }
  0x48   :  { %s1710_s25 = scalar_lea.hbm %s2078_s2, 1024 }
  0x49   :  { %p1711_p4 = scmp.ne.s32.totalorder %s2078_s2, %s1710_s25  ;;  %p1714_p5 = scmp.lt.u32.totalorder %s1710_s25, %s2078_s2 }
  0x4b   :  { %p1716_p6 = pnand %p1714_p5, %p1711_p4 }
  0x4d   :  { %1719 = shalt.err (!%p1716_p6)
}
  0x4e   :  { %s1720_s0 = scalar_lea.vmem %s50_s18, 1024  ;;  %p1725_p8 = scmp.lt.s32.totalorder %s50_s18, %s50_s18 }
  0x4f   :  { %p1721_p7 = scmp.ne.s32.totalorder %s50_s18, %s1720_s0  ;;  %p1726_p9 = scmp.lt.s32.totalorder %s1720_s0, %s1720_s0 }
  0x51   :  { %p1727_p10 = por %p1726_p9, %p1725_p8 }
  0x53   :  { %p1728_p11 = pnand %p1727_p10, %p1721_p7 }
  0x55   :  { %1731 = shalt.err (!%p1728_p11)
}
  0x56   :  { %55 = dma.hbm_to_vmem [thread:$0]  %s2078_s2, 1024, %s50_s18, [#allocation6], %s1834_s21, %s1834_s21, %s1835_s22  }
  0x57   :  { %s1732_s11 = scalar_lea.hbm %s2080_s4, 1024 }
  0x58   :  { %p1733_p12 = scmp.ne.s32.totalorder %s2080_s4, %s1732_s11  ;;  %p1736_p13 = scmp.lt.u32.totalorder %s1732_s11, %s2080_s4 }
  0x5a   :  { %p1738_p0 = pnand %p1736_p13, %p1733_p12 }
  0x5c   :  { %1741 = shalt.err (!%p1738_p0)
}
  0x5d   :  { %s1742_s5 = scalar_lea.vmem %s1969_s20, 1024  ;;  %p1747_p2 = scmp.lt.s32.totalorder %s1969_s20, %s1969_s20 }
  0x5e   :  { %p1743_p1 = scmp.ne.s32.totalorder %s1969_s20, %s1742_s5  ;;  %p1748_p3 = scmp.lt.s32.totalorder %s1742_s5, %s1742_s5 }
  0x60   :  { %p1749_p4 = por %p1748_p3, %p1747_p2 }
  0x62   :  { %p1750_p5 = pnand %p1749_p4, %p1743_p1 }
  0x64   :  { %1753 = shalt.err (!%p1750_p5)
}
  0x65   :  { %79 = dma.hbm_to_vmem [thread:$0]  %s2080_s4, 1024, %s1969_s20, [#allocation9], %s1834_s21, %s1834_s21, %s1835_s22  }
  0x66   :  { %s1840_s16 = smov [#allocation13]   ;;  %s1841_s19 = smov [#allocation14]  }
  0x67   :  { %s97_s18 = sshll.u32 %s1840_s16, 4  ;;  %s109_s23 = sshll.u32 %s1841_s19, 4  ;;  %s98_s18 = int_to_ptr.vmem [resolvable:$true] %s97_s18  ;;  %s2006_s23 = int_to_ptr.vmem [resolvable:$true] %s109_s23 }
  0x68   :  { %s1754_s26 = scalar_lea.hbm %s2082_s6, 1024 }
  0x69   :  { %p1755_p6 = scmp.ne.s32.totalorder %s2082_s6, %s1754_s26  ;;  %p1758_p7 = scmp.lt.u32.totalorder %s1754_s26, %s2082_s6 }
  0x6b   :  { %p1760_p8 = pnand %p1758_p7, %p1755_p6 }
  0x6d   :  { %1763 = shalt.err (!%p1760_p8)
}
  0x6e   :  { %s1764_s4 = scalar_lea.vmem %s98_s18, 1024  ;;  %p1769_p10 = scmp.lt.s32.totalorder %s98_s18, %s98_s18 }
  0x6f   :  { %p1765_p9 = scmp.ne.s32.totalorder %s98_s18, %s1764_s4  ;;  %p1770_p11 = scmp.lt.s32.totalorder %s1764_s4, %s1764_s4 }
  0x71   :  { %p1771_p12 = por %p1770_p11, %p1769_p10 }
  0x73   :  { %p1772_p13 = pnand %p1771_p12, %p1765_p9 }
  0x75   :  { %1775 = shalt.err (!%p1772_p13)
}
  0x76   :  { %103 = dma.hbm_to_vmem [thread:$0]  %s2082_s6, 1024, %s98_s18, [#allocation12], %s1834_s21, %s1834_s21, %s1835_s22  }
  0x77   :  { %s1776_s30 = scalar_lea.hbm %s2083_s7, 1024 }
  0x78   :  { %p1777_p0 = scmp.ne.s32.totalorder %s2083_s7, %s1776_s30  ;;  %p1780_p1 = scmp.lt.u32.totalorder %s1776_s30, %s2083_s7 }
  0x7a   :  { %p1782_p2 = pnand %p1780_p1, %p1777_p0 }
  0x7c   :  { %1785 = shalt.err (!%p1782_p2)
}
  0x7d   :  { %s1786_s14 = scalar_lea.vmem %s2006_s23, 1024  ;;  %p1791_p4 = scmp.lt.s32.totalorder %s2006_s23, %s2006_s23 }
  0x7e   :  { %p1787_p3 = scmp.ne.s32.totalorder %s2006_s23, %s1786_s14  ;;  %p1792_p5 = scmp.lt.s32.totalorder %s1786_s14, %s1786_s14 }
  0x80   :  { %p1793_p6 = por %p1792_p5, %p1791_p4 }
  0x82   :  { %p1794_p7 = pnand %p1793_p6, %p1787_p3 }
  0x84   :  { %1797 = shalt.err (!%p1794_p7)
}
  0x85   :  { %115 = dma.hbm_to_vmem [thread:$0]  %s2083_s7, 1024, %s2006_s23, [#allocation15], %s1834_s21, %s1834_s21, %s1835_s22  }
  0x86   :  { %1820 = dma.done.wait [#allocation3], 512  }
  0x87   :  { %1821 = vsyncadd [#allocation3], 4294966784 }
  0x88   :  { %1822 = dma.done.wait [#allocation6], 2048  }
  0x89   :  { %1823 = vsyncadd [#allocation6], 4294965248 }
  0x8a   :  { %1824 = dma.done.wait [#allocation9], 2048  }
  0x8b   :  { %1825 = vsyncadd [#allocation9], 4294965248 }
  0x8c   :  { %1826 = dma.done.wait [#allocation12], 2048  }
  0x8d   :  { %1827 = vsyncadd [#allocation12], 4294965248 }
  0x8e   :  { %1828 = dma.done.wait [#allocation15], 1024  }
  0x8f   :  { %1829 = vsyncadd [#allocation15], 4294966272  ;;  %v1562_v0 = vld [vmem:[#allocation5] sm:$0xff]   ;;  %v1563_v1 = vld [vmem:[#allocation5 + $0x8] sm:$0xff]   ;;  %s1842_s27 = smov [#allocation16]  }
  0x90   :  { %1365 = vmatprep.subr.bf16.mxu0 %v1562_v0  ;;  %v1564_v2 = vld [vmem:[#allocation5 + $0x10] sm:$0xff]   ;;  %v1565_v3 = vld [vmem:[#allocation5 + $0x18] sm:$0xff]   ;;  %v1570_v4 = vld [vmem:[#allocation2] sm:$0xff]   ;;  %s1198_s0 = sshll.u32 %s1842_s27, 4  ;;  %s1199_s0 = int_to_ptr.vmem [resolvable:$true] %s1198_s0 }
  0x91   :  { %1366 = vmatpush3.bf16.msra.mxu0 %v1562_v0  ;;  %1381 = vmatprep.mubr.bf16.mxu0 %v1570_v4  ;;  %v1566_v5 = vld [vmem:[#allocation5 + $0x20] sm:$0xff]   ;;  %v1575_v7 = vld [vmem:[#allocation7 + $0x8] sm:$0xff]   ;;  %v1576_v9 = vld [vmem:[#allocation7 + $0x10] sm:$0xff]   ;;  %p1803_p9 = scmp.lt.s32.totalorder %s1199_s0, %s1199_s0 }
  0x92   :  { %1367 = vmatprep.subr.bf16.mxu0 %v1563_v1  ;;  %v1574_v6 = vld [vmem:[#allocation7] sm:$0xff]   ;;  %v1567_v8 = vld [vmem:[#allocation5 + $0x28] sm:$0xff]   ;;  %v1568_v10 = vld [vmem:[#allocation5 + $0x30] sm:$0xff]  }
  0x93   :  { %1389 = vmatprep.subr.bf16.mxu1 %v1574_v6  ;;  %v1577_v11 = vld [vmem:[#allocation7 + $0x18] sm:$0xff]   ;;  %v1578_v13 = vld [vmem:[#allocation7 + $0x20] sm:$0xff]   ;;  %v1579_v14 = vld [vmem:[#allocation7 + $0x28] sm:$0xff]  }
  0x94   :  { %1390 = vmatpush3.bf16.msra.mxu1 %v1574_v6  ;;  %v1569_v12 = vld [vmem:[#allocation5 + $0x38] sm:$0xff]   ;;  %v1571_v15 = vld [vmem:[#allocation2 + $0x8] sm:$0xff]   ;;  %v1572_v16 = vld [vmem:[#allocation2 + $0x10] sm:$0xff]  }
  0x95   :  { %1368 = vmatpush3.bf16.msra.mxu0 %v1563_v1  ;;  %1391 = vmatprep.subr.bf16.mxu1 %v1575_v7  ;;  %v1573_v17 = vld [vmem:[#allocation2 + $0x18] sm:$0xff]   ;;  %v1580_v18 = vld [vmem:[#allocation7 + $0x30] sm:$0xff]   ;;  %v1582_v20 = vld [vmem:[#allocation8] sm:$0xff]  }
  0x96   :  { %1369 = vmatprep.subr.bf16.mxu0 %v1564_v2  ;;  %v1581_v19 = vld [vmem:[#allocation7 + $0x38] sm:$0xff]   ;;  %v1583_v21 = vld [vmem:[#allocation8 + $0x8] sm:$0xff]   ;;  %v1584_v22 = vld [vmem:[#allocation8 + $0x10] sm:$0xff]  }
  0x97   :  { %v1585_v23 = vld [vmem:[#allocation8 + $0x18] sm:$0xff]   ;;  %v1586_v24 = vld [vmem:[#allocation8 + $0x20] sm:$0xff]   ;;  %v1587_v25 = vld [vmem:[#allocation8 + $0x28] sm:$0xff]  }
  0x98   :  { %1392 = vmatpush3.bf16.msra.mxu1 %v1575_v7  ;;  %v1214_v26 = vld [vmem:[%s2084_s8] ss:$0 sm:$0xff]  ;;  %v1588_v55 = vld [vmem:[#allocation8 + $0x30] sm:$0xff]   ;;  %v1589_v56 = vld [vmem:[#allocation8 + $0x38] sm:$0xff]  }
  0x99   :  { %1370 = vmatpush3.bf16.msra.mxu0 %v1564_v2  ;;  %1393 = vmatprep.subr.bf16.mxu1 %v1576_v9  ;;  %v1590_v57 = vld [vmem:[#allocation10] sm:$0xff]   ;;  %v1591_v58 = vld [vmem:[#allocation10 + $0x8] sm:$0xff]   ;;  %v1592_v59 = vld [vmem:[#allocation10 + $0x10] sm:$0xff]  }
  0x9a   :  { %1371 = vmatprep.subr.bf16.mxu0 %v1565_v3  ;;  %v1593_v60 = vld [vmem:[#allocation10 + $0x18] sm:$0xff]   ;;  %v1594_v61 = vld [vmem:[#allocation10 + $0x20] sm:$0xff]   ;;  %v1595_v62 = vld [vmem:[#allocation10 + $0x28] sm:$0xff]  }
  0x9b   :  { %v1227_v63 = vld [vmem:[%s2084_s8 + $0x1] ss:$0 sm:$0xff] }
  0x9c   :  { %1394 = vmatpush3.bf16.msra.mxu1 %v1576_v9 }
  0x9d   :  { %1372 = vmatpush3.bf16.msra.mxu0 %v1565_v3  ;;  %1395 = vmatprep.subr.bf16.mxu1 %v1577_v11 }
  0x9e   :  { %1373 = vmatprep.subr.bf16.mxu0 %v1566_v5 }
  0xa0   :  { %1396 = vmatpush3.bf16.msra.mxu1 %v1577_v11 }
  0xa1   :  { %1374 = vmatpush3.bf16.msra.mxu0 %v1566_v5  ;;  %1397 = vmatprep.subr.bf16.mxu1 %v1578_v13 }
  0xa2   :  { %1375 = vmatprep.subr.bf16.mxu0 %v1567_v8 }
  0xa4   :  { %1398 = vmatpush3.bf16.msra.mxu1 %v1578_v13 }
  0xa5   :  { %1376 = vmatpush3.bf16.msra.mxu0 %v1567_v8  ;;  %1399 = vmatprep.subr.bf16.mxu1 %v1579_v14 }
  0xa6   :  { %1377 = vmatprep.subr.bf16.mxu0 %v1568_v10 }
  0xa8   :  { %1400 = vmatpush3.bf16.msra.mxu1 %v1579_v14 }
  0xa9   :  { %1378 = vmatpush3.bf16.msra.mxu0 %v1568_v10  ;;  %1401 = vmatprep.subr.bf16.mxu1 %v1580_v18 }
  0xaa   :  { %1379 = vmatprep.subr.bf16.mxu0 %v1569_v12 }
  0xac   :  { %1402 = vmatpush3.bf16.msra.mxu1 %v1580_v18 }
  0xad   :  { %1380 = vmatpush3.bf16.msra.mxu0 %v1569_v12  ;;  %1403 = vmatprep.subr.bf16.mxu1 %v1581_v19 }
  0xae   :  { %1413 = vmatprep.subr.bf16.mxu0 %v1582_v20 }
  0xb0   :  { %1382 = vmatmul.mubr.bf16.vlgmr.msra.gmra.mrb[0].mxu0 %v1571_v15  ;;  %1404 = vmatpush3.bf16.msra.mxu1 %v1581_v19 }
  0xb1   :  { %1385 = vmatprep.mubr.bf16.mxu0 %v1572_v16  ;;  %1414 = vmatpush3.bf16.msra.mxu0 %v1582_v20 }
  0xb2   :  { %1415 = vmatprep.subr.bf16.mxu0 %v1583_v21  ;;  %1437 = vmatprep.subr.bf16.mxu1 %v1590_v57 }
  0xb5   :  { %1416 = vmatpush3.bf16.msra.mxu0 %v1583_v21 }
  0xb6   :  { %1417 = vmatprep.subr.bf16.mxu0 %v1584_v22 }
  0xb8   :  { %1386 = vmatmul.mubr.bf16.gmra.mrb[4].mxu0 %v1573_v17 }
  0xb9   :  { %1418 = vmatpush3.bf16.msra.mxu0 %v1584_v22 }
  0xba   :  { %1419 = vmatprep.subr.bf16.mxu0 %v1585_v23 }
  0xbd   :  { %1420 = vmatpush3.bf16.msra.mxu0 %v1585_v23 }
  0xbe   :  { %1421 = vmatprep.subr.bf16.mxu0 %v1586_v24 }
  0xc1   :  { %1422 = vmatpush3.bf16.msra.mxu0 %v1586_v24 }
  0xc2   :  { %1423 = vmatprep.subr.bf16.mxu0 %v1587_v25 }
  0xc5   :  { %1424 = vmatpush3.bf16.msra.mxu0 %v1587_v25 }
  0xc6   :  { %1425 = vmatprep.subr.bf16.mxu0 %v1588_v55 }
  0xc9   :  { %1426 = vmatpush3.bf16.msra.mxu0 %v1588_v55 }
  0xca   :  { %1427 = vmatprep.subr.bf16.mxu0 %v1589_v56 }
  0xcd   :  { %1428 = vmatpush3.bf16.msra.mxu0 %v1589_v56 }
 0x183   :  { %v1383_v27 = vpop.f32.mrb[0].mxu0 }
 0x184   :  { %v287_v28 = vadd.f32 %v1383_v27, %v1214_v26  ;;  %v278_v29 = vpop.f32.mrb[1].mxu0 }
 0x185   :  { %v279_v30 = vadd.f32 %v1214_v26, %v278_v29  ;;  %v1384_v31 = vpop.f32.mrb[2].mxu0  ;;  %v1597_v29 = vld [vmem:[#allocation10 + $0x38] sm:$0xff]  }
 0x186   :  { %v290_v32 = vadd.f32 %v1384_v31, %v1214_v26  ;;  %v281_v33 = vpop.f32.mrb[3].mxu0  ;;  %v311_v35 = vmax.f32 %v287_v28, 0.0  ;;  %v1596_v28 = vld [vmem:[#allocation10 + $0x30] sm:$0xff]   ;;  %v1599_v31 = vld [vmem:[#allocation11 + $0x8] sm:$0xff]  }
 0x187   :  { %v282_v34 = vadd.f32 %v1214_v26, %v281_v33  ;;  %v309_v37 = vmax.f32 %v279_v30, 0.0  ;;  %v1598_v30 = vld [vmem:[#allocation11] sm:$0xff]   ;;  %v1601_v33 = vld [vmem:[#allocation11 + $0x18] sm:$0xff]  }
 0x188   :  { %v312_v36 = vmax.f32 %v290_v32, 0.0  ;;  %1461 = vmatprep.subr.bf16.mxu0 %v1598_v30  ;;  %v1600_v32 = vld [vmem:[#allocation11 + $0x10] sm:$0xff]  }
 0x189   :  { %v310_v38 = vmax.f32 %v282_v34, 0.0  ;;  %v1602_v34 = vld [vmem:[#allocation11 + $0x20] sm:$0xff]  }
 0x18a   :  { %v334_v39 = vpack.c.bf16 %v312_v36, %v311_v35  ;;  %v1603_v35 = vld [vmem:[#allocation11 + $0x28] sm:$0xff]   ;;  %v1236_v36 = vld [vmem:[%s2084_s8 + $0x2] ss:$0 sm:$0xff] }
 0x18b   :  { %v1387_v40 = vpop.f32.mrb[4].mxu0  ;;  %v333_v41 = vpack.c.bf16 %v310_v38, %v309_v37 }
 0x18c   :  { %v303_v42 = vadd.f32 %v1387_v40, %v1214_v26  ;;  %v294_v43 = vpop.f32.mrb[5].mxu0 }
 0x18d   :  { %v295_v44 = vadd.f32 %v1214_v26, %v294_v43  ;;  %v1388_v45 = vpop.f32.mrb[6].mxu0  ;;  %1405 = vmatprep.mubr.bf16.mxu1 %v333_v41 }
 0x18e   :  { %v306_v46 = vadd.f32 %v1388_v45, %v1214_v26  ;;  %v297_v47 = vpop.f32.mrb[7].mxu0  ;;  %1406 = vmatmul.mubr.bf16.vlgmr.msra.gmra.mrb[0].mxu1 %v334_v39  ;;  %v315_v49 = vmax.f32 %v303_v42, 0.0 }
 0x18f   :  { %v298_v48 = vadd.f32 %v1214_v26, %v297_v47  ;;  %v313_v51 = vmax.f32 %v295_v44, 0.0  ;;  %1438 = vmatpush3.bf16.msra.mxu1 %v1590_v57 }
 0x190   :  { %v316_v50 = vmax.f32 %v306_v46, 0.0  ;;  %1439 = vmatprep.subr.bf16.mxu1 %v1591_v58 }
 0x191   :  { %v314_v52 = vmax.f32 %v298_v48, 0.0 }
 0x192   :  { %v336_v53 = vpack.c.bf16 %v316_v50, %v315_v49 }
 0x193   :  { %v335_v54 = vpack.c.bf16 %v314_v52, %v313_v51  ;;  %1440 = vmatpush3.bf16.msra.mxu1 %v1591_v58 }
 0x194   :  { %1441 = vmatprep.subr.bf16.mxu1 %v1592_v59 }
 0x195   :  { %1409 = vmatprep.mubr.bf16.mxu1 %v335_v54 }
 0x196   :  { %1410 = vmatmul.mubr.bf16.gmra.mrb[4].mxu1 %v336_v53 }
 0x197   :  { %1442 = vmatpush3.bf16.msra.mxu1 %v1592_v59 }
 0x198   :  { %1443 = vmatprep.subr.bf16.mxu1 %v1593_v60 }
 0x19b   :  { %1444 = vmatpush3.bf16.msra.mxu1 %v1593_v60 }
 0x19c   :  { %1445 = vmatprep.subr.bf16.mxu1 %v1594_v61 }
 0x19f   :  { %1446 = vmatpush3.bf16.msra.mxu1 %v1594_v61 }
 0x1a0   :  { %1447 = vmatprep.subr.bf16.mxu1 %v1595_v62 }
 0x1a3   :  { %1448 = vmatpush3.bf16.msra.mxu1 %v1595_v62 }
 0x1a4   :  { %1449 = vmatprep.subr.bf16.mxu1 %v1596_v28 }
 0x1a7   :  { %1450 = vmatpush3.bf16.msra.mxu1 %v1596_v28 }
 0x1a8   :  { %1451 = vmatprep.subr.bf16.mxu1 %v1597_v29 }
 0x1ab   :  { %1452 = vmatpush3.bf16.msra.mxu1 %v1597_v29 }
 0x261   :  { %v1407_v0 = vpop.f32.mrb[0].mxu1 }
 0x262   :  { %v433_v1 = vadd.f32 %v1407_v0, %v1227_v63  ;;  %v424_v2 = vpop.f32.mrb[1].mxu1 }
 0x263   :  { %v425_v3 = vadd.f32 %v1227_v63, %v424_v2  ;;  %v1408_v4 = vpop.f32.mrb[2].mxu1  ;;  %v1605_v2 = vld [vmem:[#allocation11 + $0x38] sm:$0xff]  }
 0x264   :  { %v436_v5 = vadd.f32 %v1408_v4, %v1227_v63  ;;  %v427_v6 = vpop.f32.mrb[3].mxu1  ;;  %v457_v8 = vmax.f32 %v433_v1, 0.0  ;;  %v1604_v1 = vld [vmem:[#allocation11 + $0x30] sm:$0xff]   ;;  %v1607_v4 = vld [vmem:[#allocation13 + $0x8] sm:$0xff]  }
 0x265   :  { %v428_v7 = vadd.f32 %v1227_v63, %v427_v6  ;;  %v455_v10 = vmax.f32 %v425_v3, 0.0  ;;  %v1606_v3 = vld [vmem:[#allocation13] sm:$0xff]   ;;  %v1609_v6 = vld [vmem:[#allocation13 + $0x18] sm:$0xff]  }
 0x266   :  { %v458_v9 = vmax.f32 %v436_v5, 0.0  ;;  %1485 = vmatprep.subr.bf16.mxu1 %v1606_v3  ;;  %v1608_v5 = vld [vmem:[#allocation13 + $0x10] sm:$0xff]  }
 0x267   :  { %v456_v11 = vmax.f32 %v428_v7, 0.0  ;;  %v1610_v7 = vld [vmem:[#allocation13 + $0x20] sm:$0xff]  }
 0x268   :  { %v480_v12 = vpack.c.bf16 %v458_v9, %v457_v8  ;;  %v1611_v8 = vld [vmem:[#allocation13 + $0x28] sm:$0xff]   ;;  %v1245_v9 = vld [vmem:[%s2084_s8 + $0x3] ss:$0 sm:$0xff] }
 0x269   :  { %v479_v13 = vpack.c.bf16 %v456_v11, %v455_v10  ;;  %v1411_v14 = vpop.f32.mrb[4].mxu1 }
 0x26a   :  { %v449_v15 = vadd.f32 %v1411_v14, %v1227_v63  ;;  %v440_v16 = vpop.f32.mrb[5].mxu1 }
 0x26b   :  { %v441_v17 = vadd.f32 %v1227_v63, %v440_v16  ;;  %v1412_v18 = vpop.f32.mrb[6].mxu1  ;;  %1429 = vmatprep.mubr.bf16.mxu0 %v479_v13 }
 0x26c   :  { %v452_v19 = vadd.f32 %v1412_v18, %v1227_v63  ;;  %v443_v20 = vpop.f32.mrb[7].mxu1  ;;  %1430 = vmatmul.mubr.bf16.vlgmr.msra.gmra.mrb[8].mxu0 %v480_v12  ;;  %v461_v22 = vmax.f32 %v449_v15, 0.0 }
 0x26d   :  { %v444_v21 = vadd.f32 %v1227_v63, %v443_v20  ;;  %v459_v24 = vmax.f32 %v441_v17, 0.0  ;;  %1462 = vmatpush3.bf16.msra.mxu0 %v1598_v30 }
 0x26e   :  { %v462_v23 = vmax.f32 %v452_v19, 0.0  ;;  %1463 = vmatprep.subr.bf16.mxu0 %v1599_v31 }
 0x26f   :  { %v460_v25 = vmax.f32 %v444_v21, 0.0 }
 0x270   :  { %v482_v26 = vpack.c.bf16 %v462_v23, %v461_v22 }
 0x271   :  { %v481_v27 = vpack.c.bf16 %v460_v25, %v459_v24  ;;  %1464 = vmatpush3.bf16.msra.mxu0 %v1599_v31 }
 0x272   :  { %1465 = vmatprep.subr.bf16.mxu0 %v1600_v32 }
 0x273   :  { %1433 = vmatprep.mubr.bf16.mxu0 %v481_v27 }
 0x274   :  { %1434 = vmatmul.mubr.bf16.gmra.mrb[12].mxu0 %v482_v26 }
 0x275   :  { %1466 = vmatpush3.bf16.msra.mxu0 %v1600_v32 }
 0x276   :  { %1467 = vmatprep.subr.bf16.mxu0 %v1601_v33 }
 0x279   :  { %1468 = vmatpush3.bf16.msra.mxu0 %v1601_v33 }
 0x27a   :  { %1469 = vmatprep.subr.bf16.mxu0 %v1602_v34 }
 0x27d   :  { %1470 = vmatpush3.bf16.msra.mxu0 %v1602_v34 }
 0x27e   :  { %1471 = vmatprep.subr.bf16.mxu0 %v1603_v35 }
 0x281   :  { %1472 = vmatpush3.bf16.msra.mxu0 %v1603_v35 }
 0x282   :  { %1473 = vmatprep.subr.bf16.mxu0 %v1604_v1 }
 0x285   :  { %1474 = vmatpush3.bf16.msra.mxu0 %v1604_v1 }
 0x286   :  { %1475 = vmatprep.subr.bf16.mxu0 %v1605_v2 }
 0x289   :  { %1476 = vmatpush3.bf16.msra.mxu0 %v1605_v2 }
 0x33f   :  { %v1431_v37 = vpop.f32.mrb[8].mxu0 }
 0x340   :  { %v579_v38 = vadd.f32 %v1431_v37, %v1236_v36  ;;  %v570_v39 = vpop.f32.mrb[9].mxu0 }
 0x341   :  { %v571_v40 = vadd.f32 %v1236_v36, %v570_v39  ;;  %v1432_v41 = vpop.f32.mrb[10].mxu0  ;;  %v1613_v39 = vld [vmem:[#allocation13 + $0x38] sm:$0xff]  }
 0x342   :  { %v582_v42 = vadd.f32 %v1432_v41, %v1236_v36  ;;  %v573_v43 = vpop.f32.mrb[11].mxu0  ;;  %v603_v45 = vmax.f32 %v579_v38, 0.0  ;;  %v1612_v38 = vld [vmem:[#allocation13 + $0x30] sm:$0xff]   ;;  %v1615_v41 = vld [vmem:[#allocation14 + $0x8] sm:$0xff]  }
 0x343   :  { %v574_v44 = vadd.f32 %v1236_v36, %v573_v43  ;;  %v601_v47 = vmax.f32 %v571_v40, 0.0  ;;  %v1614_v40 = vld [vmem:[#allocation14] sm:$0xff]   ;;  %v1617_v43 = vld [vmem:[#allocation14 + $0x18] sm:$0xff]  }
 0x344   :  { %v604_v46 = vmax.f32 %v582_v42, 0.0  ;;  %1509 = vmatprep.subr.bf16.mxu0 %v1614_v40  ;;  %v1616_v42 = vld [vmem:[#allocation14 + $0x10] sm:$0xff]  }
 0x345   :  { %v602_v48 = vmax.f32 %v574_v44, 0.0  ;;  %v1618_v44 = vld [vmem:[#allocation14 + $0x20] sm:$0xff]  }
 0x346   :  { %v626_v49 = vpack.c.bf16 %v604_v46, %v603_v45  ;;  %v1619_v45 = vld [vmem:[#allocation14 + $0x28] sm:$0xff]   ;;  %v1254_v46 = vld [vmem:[%s2084_s8 + $0x4] ss:$0 sm:$0xff] }
 0x347   :  { %v625_v50 = vpack.c.bf16 %v602_v48, %v601_v47  ;;  %v1435_v51 = vpop.f32.mrb[12].mxu0 }
 0x348   :  { %v595_v52 = vadd.f32 %v1435_v51, %v1236_v36  ;;  %v586_v53 = vpop.f32.mrb[13].mxu0 }
 0x349   :  { %v587_v54 = vadd.f32 %v1236_v36, %v586_v53  ;;  %v1436_v55 = vpop.f32.mrb[14].mxu0  ;;  %1453 = vmatprep.mubr.bf16.mxu1 %v625_v50 }
 0x34a   :  { %v598_v56 = vadd.f32 %v1436_v55, %v1236_v36  ;;  %v589_v57 = vpop.f32.mrb[15].mxu0  ;;  %1454 = vmatmul.mubr.bf16.vlgmr.msra.gmra.mrb[8].mxu1 %v626_v49  ;;  %v607_v59 = vmax.f32 %v595_v52, 0.0 }
 0x34b   :  { %v590_v58 = vadd.f32 %v1236_v36, %v589_v57  ;;  %v605_v61 = vmax.f32 %v587_v54, 0.0  ;;  %1486 = vmatpush3.bf16.msra.mxu1 %v1606_v3 }
 0x34c   :  { %v608_v60 = vmax.f32 %v598_v56, 0.0  ;;  %1487 = vmatprep.subr.bf16.mxu1 %v1607_v4 }
 0x34d   :  { %v606_v62 = vmax.f32 %v590_v58, 0.0 }
 0x34e   :  { %v628_v63 = vpack.c.bf16 %v608_v60, %v607_v59 }
 0x34f   :  { %v627_v0 = vpack.c.bf16 %v606_v62, %v605_v61  ;;  %1488 = vmatpush3.bf16.msra.mxu1 %v1607_v4 }
 0x350   :  { %1489 = vmatprep.subr.bf16.mxu1 %v1608_v5 }
 0x351   :  { %1457 = vmatprep.mubr.bf16.mxu1 %v627_v0 }
 0x352   :  { %1458 = vmatmul.mubr.bf16.gmra.mrb[12].mxu1 %v628_v63 }
 0x353   :  { %1490 = vmatpush3.bf16.msra.mxu1 %v1608_v5 }
 0x354   :  { %1491 = vmatprep.subr.bf16.mxu1 %v1609_v6 }
 0x357   :  { %1492 = vmatpush3.bf16.msra.mxu1 %v1609_v6 }
 0x358   :  { %1493 = vmatprep.subr.bf16.mxu1 %v1610_v7 }
 0x35b   :  { %1494 = vmatpush3.bf16.msra.mxu1 %v1610_v7 }
 0x35c   :  { %1495 = vmatprep.subr.bf16.mxu1 %v1611_v8 }
 0x35f   :  { %1496 = vmatpush3.bf16.msra.mxu1 %v1611_v8 }
 0x360   :  { %1497 = vmatprep.subr.bf16.mxu1 %v1612_v38 }
 0x363   :  { %1498 = vmatpush3.bf16.msra.mxu1 %v1612_v38 }
 0x364   :  { %1499 = vmatprep.subr.bf16.mxu1 %v1613_v39 }
 0x367   :  { %1500 = vmatpush3.bf16.msra.mxu1 %v1613_v39 }
 0x368   :  { %1533 = vmatprep.subr.bf16.mxu1 %v1614_v40 }
 0x41d   :  { %v1455_v10 = vpop.f32.mrb[8].mxu1 }
 0x41e   :  { %v725_v11 = vadd.f32 %v1455_v10, %v1245_v9  ;;  %v716_v12 = vpop.f32.mrb[9].mxu1 }
 0x41f   :  { %v717_v13 = vadd.f32 %v1245_v9, %v716_v12  ;;  %v1456_v14 = vpop.f32.mrb[10].mxu1  ;;  %v1621_v12 = vld [vmem:[#allocation14 + $0x38] sm:$0xff]  }
 0x420   :  { %v728_v15 = vadd.f32 %v1456_v14, %v1245_v9  ;;  %v719_v16 = vpop.f32.mrb[11].mxu1  ;;  %v749_v18 = vmax.f32 %v725_v11, 0.0  ;;  %v1620_v11 = vld [vmem:[#allocation14 + $0x30] sm:$0xff]  }
 0x421   :  { %v720_v17 = vadd.f32 %v1245_v9, %v719_v16  ;;  %v747_v20 = vmax.f32 %v717_v13, 0.0  ;;  %v1263_v13 = vld [vmem:[%s2084_s8 + $0x5] ss:$0 sm:$0xff] }
 0x422   :  { %v750_v19 = vmax.f32 %v728_v15, 0.0 }
 0x423   :  { %v748_v21 = vmax.f32 %v720_v17, 0.0 }
 0x424   :  { %v772_v22 = vpack.c.bf16 %v750_v19, %v749_v18 }
 0x425   :  { %v771_v23 = vpack.c.bf16 %v748_v21, %v747_v20  ;;  %v1459_v24 = vpop.f32.mrb[12].mxu1 }
 0x426   :  { %v741_v25 = vadd.f32 %v1459_v24, %v1245_v9  ;;  %v732_v26 = vpop.f32.mrb[13].mxu1 }
 0x427   :  { %v733_v27 = vadd.f32 %v1245_v9, %v732_v26  ;;  %v1460_v28 = vpop.f32.mrb[14].mxu1  ;;  %1477 = vmatprep.mubr.bf16.mxu0 %v771_v23 }
 0x428   :  { %v744_v29 = vadd.f32 %v1460_v28, %v1245_v9  ;;  %v735_v30 = vpop.f32.mrb[15].mxu1  ;;  %1478 = vmatmul.mubr.bf16.vlgmr.msra.gmra.mrb[16].mxu0 %v772_v22  ;;  %v753_v32 = vmax.f32 %v741_v25, 0.0 }
 0x429   :  { %v736_v31 = vadd.f32 %v1245_v9, %v735_v30  ;;  %v751_v34 = vmax.f32 %v733_v27, 0.0  ;;  %1510 = vmatpush3.bf16.msra.mxu0 %v1614_v40 }
 0x42a   :  { %v754_v33 = vmax.f32 %v744_v29, 0.0  ;;  %1511 = vmatprep.subr.bf16.mxu0 %v1615_v41 }
 0x42b   :  { %v752_v35 = vmax.f32 %v736_v31, 0.0 }
 0x42c   :  { %v774_v36 = vpack.c.bf16 %v754_v33, %v753_v32 }
 0x42d   :  { %v773_v37 = vpack.c.bf16 %v752_v35, %v751_v34  ;;  %1512 = vmatpush3.bf16.msra.mxu0 %v1615_v41 }
 0x42e   :  { %1513 = vmatprep.subr.bf16.mxu0 %v1616_v42 }
 0x42f   :  { %1481 = vmatprep.mubr.bf16.mxu0 %v773_v37 }
 0x430   :  { %1482 = vmatmul.mubr.bf16.gmra.mrb[20].mxu0 %v774_v36 }
 0x431   :  { %1514 = vmatpush3.bf16.msra.mxu0 %v1616_v42 }
 0x432   :  { %1515 = vmatprep.subr.bf16.mxu0 %v1617_v43 }
 0x435   :  { %1516 = vmatpush3.bf16.msra.mxu0 %v1617_v43 }
 0x436   :  { %1517 = vmatprep.subr.bf16.mxu0 %v1618_v44 }
 0x439   :  { %1518 = vmatpush3.bf16.msra.mxu0 %v1618_v44 }
 0x43a   :  { %1519 = vmatprep.subr.bf16.mxu0 %v1619_v45 }
 0x43d   :  { %1520 = vmatpush3.bf16.msra.mxu0 %v1619_v45 }
 0x43e   :  { %1521 = vmatprep.subr.bf16.mxu0 %v1620_v11 }
 0x441   :  { %1522 = vmatpush3.bf16.msra.mxu0 %v1620_v11 }
 0x442   :  { %1523 = vmatprep.subr.bf16.mxu0 %v1621_v12 }
 0x445   :  { %1524 = vmatpush3.bf16.msra.mxu0 %v1621_v12 }
 0x4fb   :  { %v1479_v47 = vpop.f32.mrb[16].mxu0 }
 0x4fc   :  { %v871_v48 = vadd.f32 %v1479_v47, %v1254_v46  ;;  %v862_v49 = vpop.f32.mrb[17].mxu0 }
 0x4fd   :  { %v863_v50 = vadd.f32 %v1254_v46, %v862_v49  ;;  %v1480_v51 = vpop.f32.mrb[18].mxu0 }
 0x4fe   :  { %v874_v52 = vadd.f32 %v1480_v51, %v1254_v46  ;;  %v865_v53 = vpop.f32.mrb[19].mxu0  ;;  %v895_v55 = vmax.f32 %v871_v48, 0.0 }
 0x4ff   :  { %v866_v54 = vadd.f32 %v1254_v46, %v865_v53  ;;  %v893_v57 = vmax.f32 %v863_v50, 0.0 }
 0x500   :  { %v896_v56 = vmax.f32 %v874_v52, 0.0 }
 0x501   :  { %v894_v58 = vmax.f32 %v866_v54, 0.0 }
 0x502   :  { %v918_v59 = vpack.c.bf16 %v896_v56, %v895_v55 }
 0x503   :  { %v917_v60 = vpack.c.bf16 %v894_v58, %v893_v57  ;;  %v1483_v61 = vpop.f32.mrb[20].mxu0 }
 0x504   :  { %v887_v62 = vadd.f32 %v1483_v61, %v1254_v46  ;;  %v878_v63 = vpop.f32.mrb[21].mxu0 }
 0x505   :  { %v879_v0 = vadd.f32 %v1254_v46, %v878_v63  ;;  %v1484_v1 = vpop.f32.mrb[22].mxu0  ;;  %1501 = vmatprep.mubr.bf16.mxu1 %v917_v60 }
 0x506   :  { %v890_v2 = vadd.f32 %v1484_v1, %v1254_v46  ;;  %v881_v3 = vpop.f32.mrb[23].mxu0  ;;  %1502 = vmatmul.mubr.bf16.vlgmr.msra.gmra.mrb[16].mxu1 %v918_v59  ;;  %v899_v5 = vmax.f32 %v887_v62, 0.0 }
 0x507   :  { %v882_v4 = vadd.f32 %v1254_v46, %v881_v3  ;;  %1541 = vmatpush3.bf16.msra.mxu1 %v1614_v40  ;;  %v897_v7 = vmax.f32 %v879_v0, 0.0 }
 0x508   :  { %v900_v6 = vmax.f32 %v890_v2, 0.0  ;;  %1534 = vmatprep.subr.bf16.mxu1 %v1615_v41 }
 0x509   :  { %v898_v8 = vmax.f32 %v882_v4, 0.0 }
 0x50a   :  { %v920_v9 = vpack.c.bf16 %v900_v6, %v899_v5 }
 0x50b   :  { %v919_v10 = vpack.c.bf16 %v898_v8, %v897_v7  ;;  %1542 = vmatpush3.bf16.msra.mxu1 %v1615_v41 }
 0x50c   :  { %1535 = vmatprep.subr.bf16.mxu1 %v1616_v42 }
 0x50d   :  { %1505 = vmatprep.mubr.bf16.mxu1 %v919_v10 }
 0x50e   :  { %1506 = vmatmul.mubr.bf16.gmra.mrb[20].mxu1 %v920_v9 }
 0x50f   :  { %1543 = vmatpush3.bf16.msra.mxu1 %v1616_v42  ;;  %v1272_v42 = vld [vmem:[%s2084_s8 + $0x6] ss:$0 sm:$0xff]  ;;  %s1798_s8 = scalar_lea.vmem %s1199_s0, 1024 }
 0x510   :  { %1536 = vmatprep.subr.bf16.mxu1 %v1617_v43  ;;  %p1799_p8 = scmp.ne.s32.totalorder %s1199_s0, %s1798_s8  ;;  %p1804_p10 = scmp.lt.s32.totalorder %s1798_s8, %s1798_s8 }
 0x512   :  { %p1805_p11 = por %p1804_p10, %p1803_p9 }
 0x513   :  { %1544 = vmatpush3.bf16.msra.mxu1 %v1617_v43 }
 0x514   :  { %1537 = vmatprep.subr.bf16.mxu1 %v1618_v44  ;;  %p1806_p12 = pnand %p1805_p11, %p1799_p8 }
 0x517   :  { %1545 = vmatpush3.bf16.msra.mxu1 %v1618_v44 }
 0x518   :  { %1538 = vmatprep.subr.bf16.mxu1 %v1619_v45 }
 0x51b   :  { %1546 = vmatpush3.bf16.msra.mxu1 %v1619_v45 }
 0x51c   :  { %1539 = vmatprep.subr.bf16.mxu1 %v1620_v11 }
 0x51f   :  { %1547 = vmatpush3.bf16.msra.mxu1 %v1620_v11 }
 0x520   :  { %1540 = vmatprep.subr.bf16.mxu1 %v1621_v12 }
 0x523   :  { %1548 = vmatpush3.bf16.msra.mxu1 %v1621_v12 }
 0x5d9   :  { %v1503_v14 = vpop.f32.mrb[16].mxu1 }
 0x5da   :  { %v1017_v15 = vadd.f32 %v1503_v14, %v1263_v13  ;;  %v1008_v16 = vpop.f32.mrb[17].mxu1 }
 0x5db   :  { %v1009_v17 = vadd.f32 %v1263_v13, %v1008_v16  ;;  %v1504_v18 = vpop.f32.mrb[18].mxu1 }
 0x5dc   :  { %v1020_v19 = vadd.f32 %v1504_v18, %v1263_v13  ;;  %v1011_v20 = vpop.f32.mrb[19].mxu1  ;;  %v1041_v22 = vmax.f32 %v1017_v15, 0.0 }
 0x5dd   :  { %v1012_v21 = vadd.f32 %v1263_v13, %v1011_v20  ;;  %v1039_v24 = vmax.f32 %v1009_v17, 0.0 }
 0x5de   :  { %v1042_v23 = vmax.f32 %v1020_v19, 0.0 }
 0x5df   :  { %v1040_v25 = vmax.f32 %v1012_v21, 0.0 }
 0x5e0   :  { %v1064_v26 = vpack.c.bf16 %v1042_v23, %v1041_v22 }
 0x5e1   :  { %v1063_v27 = vpack.c.bf16 %v1040_v25, %v1039_v24  ;;  %v1507_v28 = vpop.f32.mrb[20].mxu1 }
 0x5e2   :  { %v1033_v29 = vadd.f32 %v1507_v28, %v1263_v13  ;;  %v1024_v30 = vpop.f32.mrb[21].mxu1 }
 0x5e3   :  { %v1025_v31 = vadd.f32 %v1263_v13, %v1024_v30  ;;  %v1508_v32 = vpop.f32.mrb[22].mxu1  ;;  %1525 = vmatprep.mubr.bf16.mxu0 %v1063_v27 }
 0x5e4   :  { %v1036_v33 = vadd.f32 %v1508_v32, %v1263_v13  ;;  %v1027_v34 = vpop.f32.mrb[23].mxu1  ;;  %1526 = vmatmul.mubr.bf16.vlgmr.msra.gmra.mrb[24].mxu0 %v1064_v26  ;;  %v1045_v36 = vmax.f32 %v1033_v29, 0.0 }
 0x5e5   :  { %v1028_v35 = vadd.f32 %v1263_v13, %v1027_v34  ;;  %v1043_v38 = vmax.f32 %v1025_v31, 0.0 }
 0x5e6   :  { %v1046_v37 = vmax.f32 %v1036_v33, 0.0 }
 0x5e7   :  { %v1044_v39 = vmax.f32 %v1028_v35, 0.0 }
 0x5e8   :  { %v1066_v40 = vpack.c.bf16 %v1046_v37, %v1045_v36 }
 0x5e9   :  { %v1065_v41 = vpack.c.bf16 %v1044_v39, %v1043_v38 }
 0x5eb   :  { %1529 = vmatprep.mubr.bf16.mxu1 %v1065_v41 }
 0x5ec   :  { %1530 = vmatmul.mubr.bf16.vlgmr.msra.gmra.mrb[24].mxu1 %v1066_v40 }
 0x6b7   :  { %v1527_v43 = vpop.f32.mrb[24].mxu0 }
 0x6b8   :  { %v1163_v44 = vadd.f32 %v1527_v43, %v1272_v42  ;;  %v1154_v45 = vpop.f32.mrb[25].mxu0 }
 0x6b9   :  { %v1155_v46 = vadd.f32 %v1272_v42, %v1154_v45  ;;  %v1528_v47 = vpop.f32.mrb[26].mxu0 }
 0x6ba   :  { %1187 = vst [vmem:[#allocation16 + $0x10] sm:$0xff] %v1163_v44  ;;  %v1166_v48 = vadd.f32 %v1528_v47, %v1272_v42  ;;  %v1157_v49 = vpop.f32.mrb[27].mxu0 }
 0x6bb   :  { %1185 = vst [vmem:[#allocation16] sm:$0xff] %v1155_v46  ;;  %v1158_v50 = vadd.f32 %v1272_v42, %v1157_v49 }
 0x6bc   :  { %1188 = vst [vmem:[#allocation16 + $0x18] sm:$0xff] %v1166_v48 }
 0x6bd   :  { %1186 = vst [vmem:[#allocation16 + $0x8] sm:$0xff] %v1158_v50 }
 0x6bf   :  { %v1531_v51 = vpop.f32.mrb[24].mxu1 }
 0x6c0   :  { %v1179_v52 = vadd.f32 %v1531_v51, %v1272_v42  ;;  %v1170_v53 = vpop.f32.mrb[25].mxu1 }
 0x6c1   :  { %v1171_v54 = vadd.f32 %v1272_v42, %v1170_v53  ;;  %v1532_v55 = vpop.f32.mrb[26].mxu1 }
 0x6c2   :  { %1191 = vst [vmem:[#allocation16 + $0x30] sm:$0xff] %v1179_v52  ;;  %v1182_v56 = vadd.f32 %v1532_v55, %v1272_v42  ;;  %v1173_v57 = vpop.f32.mrb[27].mxu1 }
 0x6c3   :  { %1189 = vst [vmem:[#allocation16 + $0x20] sm:$0xff] %v1171_v54  ;;  %v1174_v58 = vadd.f32 %v1272_v42, %v1173_v57 }
 0x6c4   :  { %1192 = vst [vmem:[#allocation16 + $0x38] sm:$0xff] %v1182_v56 }
 0x6c5   :  { %1190 = vst [vmem:[#allocation16 + $0x28] sm:$0xff] %v1174_v58 }
 0x6c6   :  { %1809 = shalt.err (!%p1806_p12)
}
 0x6c7   :  { %s1810_s17 = scalar_lea.hbm %s2085_s9, 1024 }
 0x6c8   :  { %p1811_p13 = scmp.ne.s32.totalorder %s2085_s9, %s1810_s17  ;;  %p1814_p0 = scmp.lt.u32.totalorder %s1810_s17, %s2085_s9 }
 0x6ca   :  { %p1816_p1 = pnand %p1814_p0, %p1811_p13 }
 0x6cc   :  { %1819 = shalt.err (!%p1816_p1)
}
 0x6cd   :  { %s1843_s13 = smov 128   ;;  %s1844_s1 = smov 8  }
 0x6ce   :  { %1204 = dma.vmem_to_hbm [thread:$0]  %s1199_s0, 1024, %s2085_s9, [#allocation4], %s1843_s13, %s1843_s13, %s1844_s1  }
 0x6cf   :  { %1830 = dma.done.wait [#allocation4], 1024  }
 0x6d0   :  { %1831 = vsyncadd [#allocation4], 4294966272 }
 0x6d1   :  { %1208 = vsyncpa [#allocation3], 1 }
 0x6d2   :  { %1209 = vsyncpa [#allocation6], 1 }
 0x6d3   :  { %1210 = vsyncpa [#allocation9], 1 }
 0x6d4   :  { %1211 = vsyncpa [#allocation12], 1 }
 0x6d5   :  { %1212 = vsyncpa [#allocation15], 1 }
 0x6d6   :  { %1213 = vsyncpa [#allocation4], 1 }

</bundles_post_ra>
